<compile_context>
chip_gen: v7x
topology: tpu7x:2x2x1
jax: 0.10.0
libtpu: 0.0.40
codegen_flags: <defaults>
</compile_context>

<pallas_src>
import jax
import jax.numpy as jnp
from jax import lax
from jax.experimental import pallas as pl
from jax.experimental.pallas import tpu as pltpu

# ---- static model config (small, consistent with the module) ----
B = 2                       # batch
L = 8                       # sequence length
D = 32                      # model_dim
H = 4                       # num_heads
DH = D // H                 # dim_per_head = 8
F = 64                      # ffn_dim (small)
NL = 2                      # number of EncoderLayers fused into one launch
BL = B * L                  # 16
HL = H * L                  # 32
# Reproduces the torch module's integer-division quirk (key.size(-1)//num_heads).
SCALE = float((DH // H) ** (-0.5))      # = 2**-0.5 here
LN_EPS = 1e-5


# --------------------------------------------------------------------------
# Kernel: one grid step == one EncoderLayer.
# --------------------------------------------------------------------------
def encoder_stack_kernel(
    x_ref, hmask_ref, bones_ref,
    wk_ref, bk_ref, wv_ref, bv_ref, wq_ref, bq_ref, wo_ref, bo_ref,
    g1_ref, be1_ref, w1_ref, bf1_ref, w2_ref, bf2_ref, g2_ref, be2_ref,
    out_ref, attn_ref, h_ref,
):
    layer = pl.program_id(0)

    # Layer 0: seed the resident residual-stream scratch with the input.
    @pl.when(layer == 0)
    def _():
        h_ref[...] = x_ref[...]

    x = h_ref[...]                       # (BL, D) carried across grid steps
    hmask = hmask_ref[...]               # (HL, D)  head block-mask
    bones = bones_ref[...]               # (HL, HL) block-diagonal ones

    # ---- Q/K/V projections: three full-width matmuls, no head slicing ------
    k = jnp.dot(x, wk_ref[0], preferred_element_type=jnp.float32) + bk_ref[0]
    v = jnp.dot(x, wv_ref[0], preferred_element_type=jnp.float32) + bv_ref[0]
    q = jnp.dot(x, wq_ref[0], preferred_element_type=jnp.float32) + bq_ref[0]

    # ---- attention: heads kept on the lane axis (no (B*H,L,8) tensors) -----
    ctx_parts, attn_parts = [], []
    for b in range(B):                               # B=2, statically unrolled
        kb = k[b * L:(b + 1) * L, :]                 # (L, D) tile-aligned slice
        vb = v[b * L:(b + 1) * L, :]
        qb = q[b * L:(b + 1) * L, :]
        # head-masked, row-tiled K'/V' of shape (H*L, D)
        kp = jnp.concatenate([kb] * H, axis=0) * hmask
        vp = jnp.concatenate([vb] * H, axis=0) * hmask
        # all heads' scores in one (L, H*L) full-width matmul
        s = lax.dot_general(qb, kp, (((1,), (1,)), ((), ())),
                            preferred_element_type=jnp.float32) * SCALE
        m = jnp.max(s, axis=-1, keepdims=True)       # global row max (shift-inv.)
        e = jnp.exp(s - m)
        # per-head-block row sums, broadcast back across lanes, via one matmul
        denom = jnp.dot(e, bones, preferred_element_type=jnp.float32)
        attn_b = e / denom                           # exact divide (external output)
        ctx_b = jnp.dot(attn_b, vp, preferred_element_type=jnp.float32)  # (L, D)
        attn_parts.append(attn_b)
        ctx_parts.append(ctx_b)

    attn_ref[0] = jnp.concatenate(attn_parts, axis=0)        # (BL, HL), one store
    ctx = jnp.concatenate(ctx_parts, axis=0)                 # (BL, D)

    # ---- output projection + residual + LayerNorm --------------------------
    o = jnp.dot(ctx, wo_ref[0], preferred_element_type=jnp.float32) + bo_ref[0]
    t = x + o
    mu = jnp.mean(t, axis=-1, keepdims=True)
    var = jnp.mean((t - mu) ** 2, axis=-1, keepdims=True)
    h1 = (t - mu) * lax.rsqrt(var + LN_EPS) * g1_ref[0] + be1_ref[0]

    # ---- position-wise FFN + residual + LayerNorm ---------------------------
    f1 = jnp.maximum(
        jnp.dot(h1, w1_ref[0], preferred_element_type=jnp.float32) + bf1_ref[0],
        0.0)
    f2 = jnp.dot(f1, w2_ref[0], preferred_element_type=jnp.float32) + bf2_ref[0]
    t2 = h1 + f2
    mu2 = jnp.mean(t2, axis=-1, keepdims=True)
    var2 = jnp.mean((t2 - mu2) ** 2, axis=-1, keepdims=True)
    y = (t2 - mu2) * lax.rsqrt(var2 + LN_EPS) * g2_ref[0] + be2_ref[0]

    h_ref[...] = y                                   # carry to next layer
    out_ref[...] = y                                 # resident output block


# --------------------------------------------------------------------------
# pallas_call construction (module level, built once).
# --------------------------------------------------------------------------
def _const_spec(shape):
    return pl.BlockSpec(shape, lambda l: (0,) * len(shape))


def _layer_spec(shape):
    return pl.BlockSpec(shape, lambda l: (l,) + (0,) * (len(shape) - 1))


_encoder_call = pl.pallas_call(
    encoder_stack_kernel,
    out_shape=(
        jax.ShapeDtypeStruct((BL, D), jnp.float32),       # final output
        jax.ShapeDtypeStruct((NL, BL, HL), jnp.float32),  # per-layer attention
    ),
    grid_spec=pltpu.PrefetchScalarGridSpec(
        num_scalar_prefetch=0,
        grid=(NL,),
        in_specs=[
            _const_spec((BL, D)),        # x
            _const_spec((HL, D)),        # head mask
            _const_spec((HL, HL)),       # block-diagonal ones
            _layer_spec((1, D, D)),      # wk
            _layer_spec((1, 1, D)),      # bk
            _layer_spec((1, D, D)),      # wv
            _layer_spec((1, 1, D)),      # bv
            _layer_spec((1, D, D)),      # wq
            _layer_spec((1, 1, D)),      # bq
            _layer_spec((1, D, D)),      # wo
            _layer_spec((1, 1, D)),      # bo
            _layer_spec((1, 1, D)),      # ln1 gamma
            _layer_spec((1, 1, D)),      # ln1 beta
            _layer_spec((1, D, F)),      # w1
            _layer_spec((1, 1, F)),      # b1
            _layer_spec((1, F, D)),      # w2
            _layer_spec((1, 1, D)),      # b2
            _layer_spec((1, 1, D)),      # ln2 gamma
            _layer_spec((1, 1, D)),      # ln2 beta
        ],
        out_specs=[
            _const_spec((BL, D)),        # output (resident across layers)
            _layer_spec((1, BL, HL)),    # attention, one block per layer
        ],
        scratch_shapes=[pltpu.VMEM((BL, D), jnp.float32)],   # residual stream
    ),
    compiler_params=pltpu.CompilerParams(
        dimension_semantics=("arbitrary",)),   # layers are sequential
    cost_estimate=pl.CostEstimate(
        flops=750_000, transcendentals=1_200, bytes_accessed=100_000),
)


# --------------------------------------------------------------------------
# One-time parameter preparation (hoisted out of the per-call hot path).
# --------------------------------------------------------------------------
def prepare_params(layers):
    st = lambda fn: jnp.stack([fn(p) for p in layers], axis=0)
    r = lax.broadcasted_iota(jnp.int32, (HL, D), 0)
    c = lax.broadcasted_iota(jnp.int32, (HL, D), 1)
    head_mask = ((r // L) == (c // DH)).astype(jnp.float32)          # (HL, D)
    r2 = lax.broadcasted_iota(jnp.int32, (HL, HL), 0)
    c2 = lax.broadcasted_iota(jnp.int32, (HL, HL), 1)
    block_ones = ((r2 // L) == (c2 // L)).astype(jnp.float32)        # (HL, HL)
    return dict(
        head_mask=head_mask, block_ones=block_ones,
        wk=st(lambda p: p["wk"].T), bk=st(lambda p: p["bk"].reshape(1, D)),
        wv=st(lambda p: p["wv"].T), bv=st(lambda p: p["bv"].reshape(1, D)),
        wq=st(lambda p: p["wq"].T), bq=st(lambda p: p["bq"].reshape(1, D)),
        wo=st(lambda p: p["wo"].T), bo=st(lambda p: p["bo"].reshape(1, D)),
        g1=st(lambda p: p["ln1_g"].reshape(1, D)),
        be1=st(lambda p: p["ln1_b"].reshape(1, D)),
        w1=st(lambda p: p["w1"].T), b1=st(lambda p: p["b1"].reshape(1, F)),
        w2=st(lambda p: p["w2"].T), b2=st(lambda p: p["b2"].reshape(1, D)),
        g2=st(lambda p: p["ln2_g"].reshape(1, D)),
        be2=st(lambda p: p["ln2_b"].reshape(1, D)),
    )


@jax.jit
def encoder_forward(x, p):
    """x: (B, L, D) f32. Returns (output (B,L,D), attentions (NL,B,H,L,L))."""
    out2d, attn3d = _encoder_call(
        x.reshape(BL, D), p["head_mask"], p["block_ones"],
        p["wk"], p["bk"], p["wv"], p["bv"], p["wq"], p["bq"], p["wo"], p["bo"],
        p["g1"], p["be1"], p["w1"], p["b1"], p["w2"], p["b2"], p["g2"], p["be2"])
    out = out2d.reshape(B, L, D)
    # attn3d[l, b*L+i, h*L+j] == attention[l, b, h, i, j]
    attns = attn3d.reshape(NL, B, L, H, L).transpose(0, 1, 3, 2, 4)
    return out, attns


# --------------------------------------------------------------------------
# Pure-JAX reference reproducing the torch forward pass.
# --------------------------------------------------------------------------
def reference(x, layers):
    h = x
    attns = []
    for p in layers:
        residual = h
        K = h @ p["wk"].T + p["bk"]
        V = h @ p["wv"].T + p["bv"]
        Q = h @ p["wq"].T + p["bq"]
        split = lambda t: t.reshape(B, L, H, DH).transpose(0, 2, 1, 3)
        Qh, Kh, Vh = split(Q), split(K), split(V)
        scores = jnp.einsum("bhqd,bhkd->bhqk", Qh, Kh) * SCALE
        attn = jax.nn.softmax(scores, axis=-1)
        attns.append(attn)
        ctx = jnp.einsum("bhqk,bhkd->bhqd", attn, Vh)
        ctx = ctx.transpose(0, 2, 1, 3).reshape(B, L, D)
        o = ctx @ p["wo"].T + p["bo"]
        t = residual + o
        mu = t.mean(-1, keepdims=True)
        var = ((t - mu) ** 2).mean(-1, keepdims=True)
        h1 = (t - mu) / jnp.sqrt(var + LN_EPS) * p["ln1_g"] + p["ln1_b"]
        f = jnp.maximum(h1 @ p["w1"].T + p["b1"], 0.0) @ p["w2"].T + p["b2"]
        t2 = h1 + f
        mu2 = t2.mean(-1, keepdims=True)
        var2 = ((t2 - mu2) ** 2).mean(-1, keepdims=True)
        h = (t2 - mu2) / jnp.sqrt(var2 + LN_EPS) * p["ln2_g"] + p["ln2_b"]
    return h, jnp.stack(attns, axis=0)


# --------------------------------------------------------------------------
if __name__ == "__main__":
    root = jax.random.PRNGKey(0)
    keys = jax.random.split(root, NL + 1)

    def init_layer(key):
        ks = jax.random.split(key, 12)
        w = lambda k, shape: jax.random.normal(k, shape, jnp.float32) * 0.05
        return dict(
            wk=w(ks[0], (D, D)), bk=w(ks[1], (D,)),
            wv=w(ks[2], (D, D)), bv=w(ks[3], (D,)),
            wq=w(ks[4], (D, D)), bq=w(ks[5], (D,)),
            wo=w(ks[6], (D, D)), bo=w(ks[7], (D,)),
            ln1_g=jnp.ones((D,), jnp.float32), ln1_b=jnp.zeros((D,), jnp.float32),
            w1=w(ks[8], (F, D)), b1=w(ks[9], (F,)),      # Conv1d(D,F,1) == Linear
            w2=w(ks[10], (D, F)), b2=w(ks[11], (D,)),    # Conv1d(F,D,1) == Linear
            ln2_g=jnp.ones((D,), jnp.float32), ln2_b=jnp.zeros((D,), jnp.float32),
        )

    layers = [init_layer(keys[i]) for i in range(NL)]
    x = jax.random.normal(keys[NL], (B, L, D), jnp.float32)

    prepared = prepare_params(layers)            # one-time, outside hot path
    out, attns = encoder_forward(x, prepared)
    jax.block_until_ready((out, attns))

    ref_out, ref_attns = reference(x, layers)
    assert jnp.allclose(attns, ref_attns, atol=1e-3, rtol=1e-3), "attention mismatch"
    assert jnp.allclose(out, ref_out, atol=1e-3, rtol=1e-3), "output mismatch"

    print("KERNEL_OK")
</pallas_src>

<mosaic_0001>
module attributes {stable_mosaic.version = 11 : i64} {
  func.func @encoder_stack_kernel(%arg0: i32, %arg1: memref<16x32xf32, #tpu.memory_space<vmem>>, %arg2: memref<32x32xf32, #tpu.memory_space<vmem>>, %arg3: memref<32x32xf32, #tpu.memory_space<vmem>>, %arg4: memref<1x32x32xf32, #tpu.memory_space<vmem>>, %arg5: memref<1x1x32xf32, #tpu.memory_space<vmem>>, %arg6: memref<1x32x32xf32, #tpu.memory_space<vmem>>, %arg7: memref<1x1x32xf32, #tpu.memory_space<vmem>>, %arg8: memref<1x32x32xf32, #tpu.memory_space<vmem>>, %arg9: memref<1x1x32xf32, #tpu.memory_space<vmem>>, %arg10: memref<1x32x32xf32, #tpu.memory_space<vmem>>, %arg11: memref<1x1x32xf32, #tpu.memory_space<vmem>>, %arg12: memref<1x1x32xf32, #tpu.memory_space<vmem>>, %arg13: memref<1x1x32xf32, #tpu.memory_space<vmem>>, %arg14: memref<1x32x64xf32, #tpu.memory_space<vmem>>, %arg15: memref<1x1x64xf32, #tpu.memory_space<vmem>>, %arg16: memref<1x64x32xf32, #tpu.memory_space<vmem>>, %arg17: memref<1x1x32xf32, #tpu.memory_space<vmem>>, %arg18: memref<1x1x32xf32, #tpu.memory_space<vmem>>, %arg19: memref<1x1x32xf32, #tpu.memory_space<vmem>>, %arg20: memref<16x32xf32, #tpu.memory_space<vmem>>, %arg21: memref<1x16x32xf32, #tpu.memory_space<vmem>>, %arg22: memref<16x32xf32, #tpu.memory_space<vmem>>) attributes {dimension_semantics = [#tpu.dimension_semantics<arbitrary>], iteration_bounds = array<i64: 2>, scalar_prefetch = 0 : i64, scratch_operands = 1 : i64, tpu.core_type = #tpu.core_type<tc>, window_params = [{pipeline_mode = #tpu.pipeline_mode<synchronous>, transform_indices = @transform_0, window_bounds = array<i64: 16, 32>}, {pipeline_mode = #tpu.pipeline_mode<synchronous>, transform_indices = @transform_1, window_bounds = array<i64: 32, 32>}, {pipeline_mode = #tpu.pipeline_mode<synchronous>, transform_indices = @transform_2, window_bounds = array<i64: 32, 32>}, {transform_indices = @transform_3, window_bounds = array<i64: 1, 32, 32>}, {transform_indices = @transform_4, window_bounds = array<i64: 1, 1, 32>}, {transform_indices = @transform_5, window_bounds = array<i64: 1, 32, 32>}, {transform_indices = @transform_6, window_bounds = array<i64: 1, 1, 32>}, {transform_indices = @transform_7, window_bounds = array<i64: 1, 32, 32>}, {transform_indices = @transform_8, window_bounds = array<i64: 1, 1, 32>}, {transform_indices = @transform_9, window_bounds = array<i64: 1, 32, 32>}, {transform_indices = @transform_10, window_bounds = array<i64: 1, 1, 32>}, {transform_indices = @transform_11, window_bounds = array<i64: 1, 1, 32>}, {transform_indices = @transform_12, window_bounds = array<i64: 1, 1, 32>}, {transform_indices = @transform_13, window_bounds = array<i64: 1, 32, 64>}, {transform_indices = @transform_14, window_bounds = array<i64: 1, 1, 64>}, {transform_indices = @transform_15, window_bounds = array<i64: 1, 64, 32>}, {transform_indices = @transform_16, window_bounds = array<i64: 1, 1, 32>}, {transform_indices = @transform_17, window_bounds = array<i64: 1, 1, 32>}, {transform_indices = @transform_18, window_bounds = array<i64: 1, 1, 32>}, {pipeline_mode = #tpu.pipeline_mode<synchronous>, transform_indices = @transform_19, window_bounds = array<i64: 16, 32>}, {transform_indices = @transform_20, window_bounds = array<i64: 1, 16, 32>}]} {
    %c0_i32 = arith.constant 0 : i32
    %0 = arith.cmpi eq, %arg0, %c0_i32 : i32
    %1 = arith.extui %0 : i1 to i32
    %c0_i32_0 = arith.constant 0 : i32
    %2 = arith.cmpi ne, %1, %c0_i32_0 : i32
    scf.if %2 {
      %c0_87 = arith.constant 0 : index
      %c0_88 = arith.constant 0 : index
      %147 = vector.load %arg1[%c0_87, %c0_88] : memref<16x32xf32, #tpu.memory_space<vmem>>, vector<16x32xf32>
      %c0_89 = arith.constant 0 : index
      %c0_90 = arith.constant 0 : index
      %148 = vector.load %arg22[%c0_89, %c0_90] : memref<16x32xf32, #tpu.memory_space<vmem>>, vector<16x32xf32>
      tpu.vector_store %arg22[%c0_89, %c0_90], %147 {strides = array<i32>} : memref<16x32xf32, #tpu.memory_space<vmem>>, vector<16x32xf32>,
    } else {
    }
    %c0 = arith.constant 0 : index
    %c0_1 = arith.constant 0 : index
    %3 = vector.load %arg22[%c0, %c0_1] : memref<16x32xf32, #tpu.memory_space<vmem>>, vector<16x32xf32>
    %c0_2 = arith.constant 0 : index
    %c0_3 = arith.constant 0 : index
    %4 = vector.load %arg2[%c0_2, %c0_3] : memref<32x32xf32, #tpu.memory_space<vmem>>, vector<32x32xf32>
    %c0_4 = arith.constant 0 : index
    %c0_5 = arith.constant 0 : index
    %5 = vector.load %arg3[%c0_4, %c0_5] : memref<32x32xf32, #tpu.memory_space<vmem>>, vector<32x32xf32>
    %c0_6 = arith.constant 0 : index
    %c0_7 = arith.constant 0 : index
    %c0_8 = arith.constant 0 : index
    %6 = vector.load %arg4[%c0_6, %c0_7, %c0_8] : memref<1x32x32xf32, #tpu.memory_space<vmem>>, vector<1x32x32xf32>
    %7 = vector.shape_cast %6 : vector<1x32x32xf32> to vector<32x32xf32>
    %cst = arith.constant dense<0.000000e+00> : vector<16x32xf32>
    %8 = tpu.matmul %3, %7, %cst {dimension_numbers = #tpu.dot_dimension_numbers<[1], [0], [0], [1], [0, 0, 1, 1], [], []>} : vector<16x32xf32>, vector<32x32xf32>, vector<16x32xf32> -> vector<16x32xf32>
    %c0_9 = arith.constant 0 : index
    %c0_10 = arith.constant 0 : index
    %c0_11 = arith.constant 0 : index
    %9 = vector.load %arg5[%c0_9, %c0_10, %c0_11] : memref<1x1x32xf32, #tpu.memory_space<vmem>>, vector<1x1x32xf32>
    %10 = vector.shape_cast %9 : vector<1x1x32xf32> to vector<1x32xf32>
    %11 = vector.broadcast %10 : vector<1x32xf32> to vector<16x32xf32>
    %12 = arith.addf %8, %11 : vector<16x32xf32>
    %c0_12 = arith.constant 0 : index
    %c0_13 = arith.constant 0 : index
    %c0_14 = arith.constant 0 : index
    %13 = vector.load %arg6[%c0_12, %c0_13, %c0_14] : memref<1x32x32xf32, #tpu.memory_space<vmem>>, vector<1x32x32xf32>
    %14 = vector.shape_cast %13 : vector<1x32x32xf32> to vector<32x32xf32>
    %cst_15 = arith.constant dense<0.000000e+00> : vector<16x32xf32>
    %15 = tpu.matmul %3, %14, %cst_15 {dimension_numbers = #tpu.dot_dimension_numbers<[1], [0], [0], [1], [0, 0, 1, 1], [], []>} : vector<16x32xf32>, vector<32x32xf32>, vector<16x32xf32> -> vector<16x32xf32>
    %c0_16 = arith.constant 0 : index
    %c0_17 = arith.constant 0 : index
    %c0_18 = arith.constant 0 : index
    %16 = vector.load %arg7[%c0_16, %c0_17, %c0_18] : memref<1x1x32xf32, #tpu.memory_space<vmem>>, vector<1x1x32xf32>
    %17 = vector.shape_cast %16 : vector<1x1x32xf32> to vector<1x32xf32>
    %18 = vector.broadcast %17 : vector<1x32xf32> to vector<16x32xf32>
    %19 = arith.addf %15, %18 : vector<16x32xf32>
    %c0_19 = arith.constant 0 : index
    %c0_20 = arith.constant 0 : index
    %c0_21 = arith.constant 0 : index
    %20 = vector.load %arg8[%c0_19, %c0_20, %c0_21] : memref<1x32x32xf32, #tpu.memory_space<vmem>>, vector<1x32x32xf32>
    %21 = vector.shape_cast %20 : vector<1x32x32xf32> to vector<32x32xf32>
    %cst_22 = arith.constant dense<0.000000e+00> : vector<16x32xf32>
    %22 = tpu.matmul %3, %21, %cst_22 {dimension_numbers = #tpu.dot_dimension_numbers<[1], [0], [0], [1], [0, 0, 1, 1], [], []>} : vector<16x32xf32>, vector<32x32xf32>, vector<16x32xf32> -> vector<16x32xf32>
    %c0_23 = arith.constant 0 : index
    %c0_24 = arith.constant 0 : index
    %c0_25 = arith.constant 0 : index
    %23 = vector.load %arg9[%c0_23, %c0_24, %c0_25] : memref<1x1x32xf32, #tpu.memory_space<vmem>>, vector<1x1x32xf32>
    %24 = vector.shape_cast %23 : vector<1x1x32xf32> to vector<1x32xf32>
    %25 = vector.broadcast %24 : vector<1x32xf32> to vector<16x32xf32>
    %26 = arith.addf %22, %25 : vector<16x32xf32>
    %27 = vector.extract_strided_slice %12 {offsets = [0, 0], sizes = [8, 32], strides = [1, 1]} : vector<16x32xf32> to vector<8x32xf32>
    %28 = vector.extract_strided_slice %19 {offsets = [0, 0], sizes = [8, 32], strides = [1, 1]} : vector<16x32xf32> to vector<8x32xf32>
    %29 = vector.extract_strided_slice %26 {offsets = [0, 0], sizes = [8, 32], strides = [1, 1]} : vector<16x32xf32> to vector<8x32xf32>
    %30 = tpu.concatenate %27, %27, %27, %27 in 0 : vector<8x32xf32>, vector<8x32xf32>, vector<8x32xf32>, vector<8x32xf32> -> vector<32x32xf32>
    %31 = arith.mulf %30, %4 : vector<32x32xf32>
    %32 = tpu.concatenate %28, %28, %28, %28 in 0 : vector<8x32xf32>, vector<8x32xf32>, vector<8x32xf32>, vector<8x32xf32> -> vector<32x32xf32>
    %33 = arith.mulf %32, %4 : vector<32x32xf32>
    %cst_26 = arith.constant dense<0.000000e+00> : vector<8x32xf32>
    %34 = tpu.matmul %29, %31, %cst_26 {dimension_numbers = #tpu.dot_dimension_numbers<[1], [1], [0], [0], [0, 0, 1, 0], [], []>} : vector<8x32xf32>, vector<32x32xf32>, vector<8x32xf32> -> vector<8x32xf32>
    %cst_27 = arith.constant 0.707106769 : f32
    %35 = vector.broadcast %cst_27 : f32 to vector<8x32xf32>
    %36 = arith.mulf %34, %35 : vector<8x32xf32>
    %cst_28 = arith.constant dense<0xFF800000> : vector<8xf32>
    %37 = vector.multi_reduction <maximumf>, %36, %cst_28 [1] : vector<8x32xf32> to vector<8xf32>
    %38 = vector.shape_cast %37 : vector<8xf32> to vector<8x1xf32>
    %39 = vector.broadcast %38 : vector<8x1xf32> to vector<8x32xf32>
    %40 = arith.subf %36, %39 : vector<8x32xf32>
    %41 = math.exp %40 : vector<8x32xf32>
    %cst_29 = arith.constant dense<0.000000e+00> : vector<8x32xf32>
    %42 = tpu.matmul %41, %5, %cst_29 {dimension_numbers = #tpu.dot_dimension_numbers<[1], [0], [0], [1], [0, 0, 1, 1], [], []>} : vector<8x32xf32>, vector<32x32xf32>, vector<8x32xf32> -> vector<8x32xf32>
    %43 = arith.divf %41, %42 : vector<8x32xf32>
    %cst_30 = arith.constant dense<0.000000e+00> : vector<8x32xf32>
    %44 = tpu.matmul %43, %33, %cst_30 {dimension_numbers = #tpu.dot_dimension_numbers<[1], [0], [0], [1], [0, 0, 1, 1], [], []>} : vector<8x32xf32>, vector<32x32xf32>, vector<8x32xf32> -> vector<8x32xf32>
    %45 = vector.extract_strided_slice %12 {offsets = [8, 0], sizes = [8, 32], strides = [1, 1]} : vector<16x32xf32> to vector<8x32xf32>
    %46 = vector.extract_strided_slice %19 {offsets = [8, 0], sizes = [8, 32], strides = [1, 1]} : vector<16x32xf32> to vector<8x32xf32>
    %47 = vector.extract_strided_slice %26 {offsets = [8, 0], sizes = [8, 32], strides = [1, 1]} : vector<16x32xf32> to vector<8x32xf32>
    %48 = tpu.concatenate %45, %45, %45, %45 in 0 : vector<8x32xf32>, vector<8x32xf32>, vector<8x32xf32>, vector<8x32xf32> -> vector<32x32xf32>
    %49 = arith.mulf %48, %4 : vector<32x32xf32>
    %50 = tpu.concatenate %46, %46, %46, %46 in 0 : vector<8x32xf32>, vector<8x32xf32>, vector<8x32xf32>, vector<8x32xf32> -> vector<32x32xf32>
    %51 = arith.mulf %50, %4 : vector<32x32xf32>
    %cst_31 = arith.constant dense<0.000000e+00> : vector<8x32xf32>
    %52 = tpu.matmul %47, %49, %cst_31 {dimension_numbers = #tpu.dot_dimension_numbers<[1], [1], [0], [0], [0, 0, 1, 0], [], []>} : vector<8x32xf32>, vector<32x32xf32>, vector<8x32xf32> -> vector<8x32xf32>
    %cst_32 = arith.constant 0.707106769 : f32
    %53 = vector.broadcast %cst_32 : f32 to vector<8x32xf32>
    %54 = arith.mulf %52, %53 : vector<8x32xf32>
    %cst_33 = arith.constant dense<0xFF800000> : vector<8xf32>
    %55 = vector.multi_reduction <maximumf>, %54, %cst_33 [1] : vector<8x32xf32> to vector<8xf32>
    %56 = vector.shape_cast %55 : vector<8xf32> to vector<8x1xf32>
    %57 = vector.broadcast %56 : vector<8x1xf32> to vector<8x32xf32>
    %58 = arith.subf %54, %57 : vector<8x32xf32>
    %59 = math.exp %58 : vector<8x32xf32>
    %cst_34 = arith.constant dense<0.000000e+00> : vector<8x32xf32>
    %60 = tpu.matmul %59, %5, %cst_34 {dimension_numbers = #tpu.dot_dimension_numbers<[1], [0], [0], [1], [0, 0, 1, 1], [], []>} : vector<8x32xf32>, vector<32x32xf32>, vector<8x32xf32> -> vector<8x32xf32>
    %61 = arith.divf %59, %60 : vector<8x32xf32>
    %cst_35 = arith.constant dense<0.000000e+00> : vector<8x32xf32>
    %62 = tpu.matmul %61, %51, %cst_35 {dimension_numbers = #tpu.dot_dimension_numbers<[1], [0], [0], [1], [0, 0, 1, 1], [], []>} : vector<8x32xf32>, vector<32x32xf32>, vector<8x32xf32> -> vector<8x32xf32>
    %63 = tpu.concatenate %43, %61 in 0 : vector<8x32xf32>, vector<8x32xf32> -> vector<16x32xf32>
    %c0_36 = arith.constant 0 : index
    %c0_37 = arith.constant 0 : index
    %c0_38 = arith.constant 0 : index
    %64 = vector.load %arg21[%c0_36, %c0_37, %c0_38] : memref<1x16x32xf32, #tpu.memory_space<vmem>>, vector<1x16x32xf32>
    %65 = vector.shape_cast %64 : vector<1x16x32xf32> to vector<16x32xf32>
    %66 = vector.shape_cast %63 : vector<16x32xf32> to vector<1x16x32xf32>
    tpu.vector_store %arg21[%c0_36, %c0_37, %c0_38], %66 {strides = array<i32>} : memref<1x16x32xf32, #tpu.memory_space<vmem>>, vector<1x16x32xf32>,
    %67 = tpu.concatenate %44, %62 in 0 : vector<8x32xf32>, vector<8x32xf32> -> vector<16x32xf32>
    %c0_39 = arith.constant 0 : index
    %c0_40 = arith.constant 0 : index
    %c0_41 = arith.constant 0 : index
    %68 = vector.load %arg10[%c0_39, %c0_40, %c0_41] : memref<1x32x32xf32, #tpu.memory_space<vmem>>, vector<1x32x32xf32>
    %69 = vector.shape_cast %68 : vector<1x32x32xf32> to vector<32x32xf32>
    %cst_42 = arith.constant dense<0.000000e+00> : vector<16x32xf32>
    %70 = tpu.matmul %67, %69, %cst_42 {dimension_numbers = #tpu.dot_dimension_numbers<[1], [0], [0], [1], [0, 0, 1, 1], [], []>} : vector<16x32xf32>, vector<32x32xf32>, vector<16x32xf32> -> vector<16x32xf32>
    %c0_43 = arith.constant 0 : index
    %c0_44 = arith.constant 0 : index
    %c0_45 = arith.constant 0 : index
    %71 = vector.load %arg11[%c0_43, %c0_44, %c0_45] : memref<1x1x32xf32, #tpu.memory_space<vmem>>, vector<1x1x32xf32>
    %72 = vector.shape_cast %71 : vector<1x1x32xf32> to vector<1x32xf32>
    %73 = vector.broadcast %72 : vector<1x32xf32> to vector<16x32xf32>
    %74 = arith.addf %70, %73 : vector<16x32xf32>
    %75 = arith.addf %3, %74 : vector<16x32xf32>
    %cst_46 = arith.constant dense<0.000000e+00> : vector<16xf32>
    %76 = vector.multi_reduction <add>, %75, %cst_46 [1] : vector<16x32xf32> to vector<16xf32>
    %77 = vector.shape_cast %76 : vector<16xf32> to vector<16x1xf32>
    %cst_47 = arith.constant 3.200000e+01 : f32
    %78 = vector.broadcast %cst_47 : f32 to vector<16x1xf32>
    %79 = arith.divf %77, %78 : vector<16x1xf32>
    %80 = vector.broadcast %79 : vector<16x1xf32> to vector<16x32xf32>
    %81 = arith.subf %75, %80 : vector<16x32xf32>
    %82 = arith.mulf %81, %81 : vector<16x32xf32>
    %cst_48 = arith.constant dense<0.000000e+00> : vector<16xf32>
    %83 = vector.multi_reduction <add>, %82, %cst_48 [1] : vector<16x32xf32> to vector<16xf32>
    %84 = vector.shape_cast %83 : vector<16xf32> to vector<16x1xf32>
    %cst_49 = arith.constant 3.200000e+01 : f32
    %85 = vector.broadcast %cst_49 : f32 to vector<16x1xf32>
    %86 = arith.divf %84, %85 : vector<16x1xf32>
    %87 = vector.broadcast %79 : vector<16x1xf32> to vector<16x32xf32>
    %88 = arith.subf %75, %87 : vector<16x32xf32>
    %cst_50 = arith.constant 9.99999974E-6 : f32
    %89 = vector.broadcast %cst_50 : f32 to vector<16x1xf32>
    %90 = arith.addf %86, %89 : vector<16x1xf32>
    %91 = math.rsqrt %90 : vector<16x1xf32>
    %92 = vector.broadcast %91 : vector<16x1xf32> to vector<16x32xf32>
    %93 = arith.mulf %88, %92 : vector<16x32xf32>
    %c0_51 = arith.constant 0 : index
    %c0_52 = arith.constant 0 : index
    %c0_53 = arith.constant 0 : index
    %94 = vector.load %arg12[%c0_51, %c0_52, %c0_53] : memref<1x1x32xf32, #tpu.memory_space<vmem>>, vector<1x1x32xf32>
    %95 = vector.shape_cast %94 : vector<1x1x32xf32> to vector<1x32xf32>
    %96 = vector.broadcast %95 : vector<1x32xf32> to vector<16x32xf32>
    %97 = arith.mulf %93, %96 : vector<16x32xf32>
    %c0_54 = arith.constant 0 : index
    %c0_55 = arith.constant 0 : index
    %c0_56 = arith.constant 0 : index
    %98 = vector.load %arg13[%c0_54, %c0_55, %c0_56] : memref<1x1x32xf32, #tpu.memory_space<vmem>>, vector<1x1x32xf32>
    %99 = vector.shape_cast %98 : vector<1x1x32xf32> to vector<1x32xf32>
    %100 = vector.broadcast %99 : vector<1x32xf32> to vector<16x32xf32>
    %101 = arith.addf %97, %100 : vector<16x32xf32>
    %c0_57 = arith.constant 0 : index
    %c0_58 = arith.constant 0 : index
    %c0_59 = arith.constant 0 : index
    %102 = vector.load %arg14[%c0_57, %c0_58, %c0_59] : memref<1x32x64xf32, #tpu.memory_space<vmem>>, vector<1x32x64xf32>
    %103 = vector.shape_cast %102 : vector<1x32x64xf32> to vector<32x64xf32>
    %cst_60 = arith.constant dense<0.000000e+00> : vector<16x64xf32>
    %104 = tpu.matmul %101, %103, %cst_60 {dimension_numbers = #tpu.dot_dimension_numbers<[1], [0], [0], [1], [0, 0, 1, 1], [], []>} : vector<16x32xf32>, vector<32x64xf32>, vector<16x64xf32> -> vector<16x64xf32>
    %c0_61 = arith.constant 0 : index
    %c0_62 = arith.constant 0 : index
    %c0_63 = arith.constant 0 : index
    %105 = vector.load %arg15[%c0_61, %c0_62, %c0_63] : memref<1x1x64xf32, #tpu.memory_space<vmem>>, vector<1x1x64xf32>
    %106 = vector.shape_cast %105 : vector<1x1x64xf32> to vector<1x64xf32>
    %107 = vector.broadcast %106 : vector<1x64xf32> to vector<16x64xf32>
    %108 = arith.addf %104, %107 : vector<16x64xf32>
    %cst_64 = arith.constant 0.000000e+00 : f32
    %109 = vector.broadcast %cst_64 : f32 to vector<16x64xf32>
    %110 = arith.maximumf %108, %109 : vector<16x64xf32>
    %c0_65 = arith.constant 0 : index
    %c0_66 = arith.constant 0 : index
    %c0_67 = arith.constant 0 : index
    %111 = vector.load %arg16[%c0_65, %c0_66, %c0_67] : memref<1x64x32xf32, #tpu.memory_space<vmem>>, vector<1x64x32xf32>
    %112 = vector.shape_cast %111 : vector<1x64x32xf32> to vector<64x32xf32>
    %cst_68 = arith.constant dense<0.000000e+00> : vector<16x32xf32>
    %113 = tpu.matmul %110, %112, %cst_68 {dimension_numbers = #tpu.dot_dimension_numbers<[1], [0], [0], [1], [0, 0, 1, 1], [], []>} : vector<16x64xf32>, vector<64x32xf32>, vector<16x32xf32> -> vector<16x32xf32>
    %c0_69 = arith.constant 0 : index
    %c0_70 = arith.constant 0 : index
    %c0_71 = arith.constant 0 : index
    %114 = vector.load %arg17[%c0_69, %c0_70, %c0_71] : memref<1x1x32xf32, #tpu.memory_space<vmem>>, vector<1x1x32xf32>
    %115 = vector.shape_cast %114 : vector<1x1x32xf32> to vector<1x32xf32>
    %116 = vector.broadcast %115 : vector<1x32xf32> to vector<16x32xf32>
    %117 = arith.addf %113, %116 : vector<16x32xf32>
    %118 = arith.addf %101, %117 : vector<16x32xf32>
    %cst_72 = arith.constant dense<0.000000e+00> : vector<16xf32>
    %119 = vector.multi_reduction <add>, %118, %cst_72 [1] : vector<16x32xf32> to vector<16xf32>
    %120 = vector.shape_cast %119 : vector<16xf32> to vector<16x1xf32>
    %cst_73 = arith.constant 3.200000e+01 : f32
    %121 = vector.broadcast %cst_73 : f32 to vector<16x1xf32>
    %122 = arith.divf %120, %121 : vector<16x1xf32>
    %123 = vector.broadcast %122 : vector<16x1xf32> to vector<16x32xf32>
    %124 = arith.subf %118, %123 : vector<16x32xf32>
    %125 = arith.mulf %124, %124 : vector<16x32xf32>
    %cst_74 = arith.constant dense<0.000000e+00> : vector<16xf32>
    %126 = vector.multi_reduction <add>, %125, %cst_74 [1] : vector<16x32xf32> to vector<16xf32>
    %127 = vector.shape_cast %126 : vector<16xf32> to vector<16x1xf32>
    %cst_75 = arith.constant 3.200000e+01 : f32
    %128 = vector.broadcast %cst_75 : f32 to vector<16x1xf32>
    %129 = arith.divf %127, %128 : vector<16x1xf32>
    %130 = vector.broadcast %122 : vector<16x1xf32> to vector<16x32xf32>
    %131 = arith.subf %118, %130 : vector<16x32xf32>
    %cst_76 = arith.constant 9.99999974E-6 : f32
    %132 = vector.broadcast %cst_76 : f32 to vector<16x1xf32>
    %133 = arith.addf %129, %132 : vector<16x1xf32>
    %134 = math.rsqrt %133 : vector<16x1xf32>
    %135 = vector.broadcast %134 : vector<16x1xf32> to vector<16x32xf32>
    %136 = arith.mulf %131, %135 : vector<16x32xf32>
    %c0_77 = arith.constant 0 : index
    %c0_78 = arith.constant 0 : index
    %c0_79 = arith.constant 0 : index
    %137 = vector.load %arg18[%c0_77, %c0_78, %c0_79] : memref<1x1x32xf32, #tpu.memory_space<vmem>>, vector<1x1x32xf32>
    %138 = vector.shape_cast %137 : vector<1x1x32xf32> to vector<1x32xf32>
    %139 = vector.broadcast %138 : vector<1x32xf32> to vector<16x32xf32>
    %140 = arith.mulf %136, %139 : vector<16x32xf32>
    %c0_80 = arith.constant 0 : index
    %c0_81 = arith.constant 0 : index
    %c0_82 = arith.constant 0 : index
    %141 = vector.load %arg19[%c0_80, %c0_81, %c0_82] : memref<1x1x32xf32, #tpu.memory_space<vmem>>, vector<1x1x32xf32>
    %142 = vector.shape_cast %141 : vector<1x1x32xf32> to vector<1x32xf32>
    %143 = vector.broadcast %142 : vector<1x32xf32> to vector<16x32xf32>
    %144 = arith.addf %140, %143 : vector<16x32xf32>
    %c0_83 = arith.constant 0 : index
    %c0_84 = arith.constant 0 : index
    %145 = vector.load %arg22[%c0_83, %c0_84] : memref<16x32xf32, #tpu.memory_space<vmem>>, vector<16x32xf32>
    tpu.vector_store %arg22[%c0_83, %c0_84], %144 {strides = array<i32>} : memref<16x32xf32, #tpu.memory_space<vmem>>, vector<16x32xf32>,
    %c0_85 = arith.constant 0 : index
    %c0_86 = arith.constant 0 : index
    %146 = vector.load %arg20[%c0_85, %c0_86] : memref<16x32xf32, #tpu.memory_space<vmem>>, vector<16x32xf32>
    tpu.vector_store %arg20[%c0_85, %c0_86], %144 {strides = array<i32>} : memref<16x32xf32, #tpu.memory_space<vmem>>, vector<16x32xf32>,
    return
  }
  func.func @transform_0(%arg0: i32) -> (i32, i32) {
    %c0_i32 = arith.constant 0 : i32
    %c0_i32_0 = arith.constant 0 : i32
    %c0_i32_1 = arith.constant 0 : i32
    return %c0_i32, %c0_i32_0 : i32, i32
  }
  func.func @transform_1(%arg0: i32) -> (i32, i32) {
    %c0_i32 = arith.constant 0 : i32
    %c0_i32_0 = arith.constant 0 : i32
    %c0_i32_1 = arith.constant 0 : i32
    return %c0_i32, %c0_i32_0 : i32, i32
  }
  func.func @transform_2(%arg0: i32) -> (i32, i32) {
    %c0_i32 = arith.constant 0 : i32
    %c0_i32_0 = arith.constant 0 : i32
    %c0_i32_1 = arith.constant 0 : i32
    return %c0_i32, %c0_i32_0 : i32, i32
  }
  func.func @transform_3(%arg0: i32) -> (i32, i32, i32) {
    %c0_i32 = arith.constant 0 : i32
    %c0_i32_0 = arith.constant 0 : i32
    %c0_i32_1 = arith.constant 0 : i32
    return %arg0, %c0_i32, %c0_i32_0 : i32, i32, i32
  }
  func.func @transform_4(%arg0: i32) -> (i32, i32, i32) {
    %c0_i32 = arith.constant 0 : i32
    %c0_i32_0 = arith.constant 0 : i32
    %c0_i32_1 = arith.constant 0 : i32
    return %arg0, %c0_i32, %c0_i32_0 : i32, i32, i32
  }
  func.func @transform_5(%arg0: i32) -> (i32, i32, i32) {
    %c0_i32 = arith.constant 0 : i32
    %c0_i32_0 = arith.constant 0 : i32
    %c0_i32_1 = arith.constant 0 : i32
    return %arg0, %c0_i32, %c0_i32_0 : i32, i32, i32
  }
  func.func @transform_6(%arg0: i32) -> (i32, i32, i32) {
    %c0_i32 = arith.constant 0 : i32
    %c0_i32_0 = arith.constant 0 : i32
    %c0_i32_1 = arith.constant 0 : i32
    return %arg0, %c0_i32, %c0_i32_0 : i32, i32, i32
  }
  func.func @transform_7(%arg0: i32) -> (i32, i32, i32) {
    %c0_i32 = arith.constant 0 : i32
    %c0_i32_0 = arith.constant 0 : i32
    %c0_i32_1 = arith.constant 0 : i32
    return %arg0, %c0_i32, %c0_i32_0 : i32, i32, i32
  }
  func.func @transform_8(%arg0: i32) -> (i32, i32, i32) {
    %c0_i32 = arith.constant 0 : i32
    %c0_i32_0 = arith.constant 0 : i32
    %c0_i32_1 = arith.constant 0 : i32
    return %arg0, %c0_i32, %c0_i32_0 : i32, i32, i32
  }
  func.func @transform_9(%arg0: i32) -> (i32, i32, i32) {
    %c0_i32 = arith.constant 0 : i32
    %c0_i32_0 = arith.constant 0 : i32
    %c0_i32_1 = arith.constant 0 : i32
    return %arg0, %c0_i32, %c0_i32_0 : i32, i32, i32
  }
  func.func @transform_10(%arg0: i32) -> (i32, i32, i32) {
    %c0_i32 = arith.constant 0 : i32
    %c0_i32_0 = arith.constant 0 : i32
    %c0_i32_1 = arith.constant 0 : i32
    return %arg0, %c0_i32, %c0_i32_0 : i32, i32, i32
  }
  func.func @transform_11(%arg0: i32) -> (i32, i32, i32) {
    %c0_i32 = arith.constant 0 : i32
    %c0_i32_0 = arith.constant 0 : i32
    %c0_i32_1 = arith.constant 0 : i32
    return %arg0, %c0_i32, %c0_i32_0 : i32, i32, i32
  }
  func.func @transform_12(%arg0: i32) -> (i32, i32, i32) {
    %c0_i32 = arith.constant 0 : i32
    %c0_i32_0 = arith.constant 0 : i32
    %c0_i32_1 = arith.constant 0 : i32
    return %arg0, %c0_i32, %c0_i32_0 : i32, i32, i32
  }
  func.func @transform_13(%arg0: i32) -> (i32, i32, i32) {
    %c0_i32 = arith.constant 0 : i32
    %c0_i32_0 = arith.constant 0 : i32
    %c0_i32_1 = arith.constant 0 : i32
    return %arg0, %c0_i32, %c0_i32_0 : i32, i32, i32
  }
  func.func @transform_14(%arg0: i32) -> (i32, i32, i32) {
    %c0_i32 = arith.constant 0 : i32
    %c0_i32_0 = arith.constant 0 : i32
    %c0_i32_1 = arith.constant 0 : i32
    return %arg0, %c0_i32, %c0_i32_0 : i32, i32, i32
  }
  func.func @transform_15(%arg0: i32) -> (i32, i32, i32) {
    %c0_i32 = arith.constant 0 : i32
    %c0_i32_0 = arith.constant 0 : i32
    %c0_i32_1 = arith.constant 0 : i32
    return %arg0, %c0_i32, %c0_i32_0 : i32, i32, i32
  }
  func.func @transform_16(%arg0: i32) -> (i32, i32, i32) {
    %c0_i32 = arith.constant 0 : i32
    %c0_i32_0 = arith.constant 0 : i32
    %c0_i32_1 = arith.constant 0 : i32
    return %arg0, %c0_i32, %c0_i32_0 : i32, i32, i32
  }
  func.func @transform_17(%arg0: i32) -> (i32, i32, i32) {
    %c0_i32 = arith.constant 0 : i32
    %c0_i32_0 = arith.constant 0 : i32
    %c0_i32_1 = arith.constant 0 : i32
    return %arg0, %c0_i32, %c0_i32_0 : i32, i32, i32
  }
  func.func @transform_18(%arg0: i32) -> (i32, i32, i32) {
    %c0_i32 = arith.constant 0 : i32
    %c0_i32_0 = arith.constant 0 : i32
    %c0_i32_1 = arith.constant 0 : i32
    return %arg0, %c0_i32, %c0_i32_0 : i32, i32, i32
  }
  func.func @transform_19(%arg0: i32) -> (i32, i32) {
    %c0_i32 = arith.constant 0 : i32
    %c0_i32_0 = arith.constant 0 : i32
    %c0_i32_1 = arith.constant 0 : i32
    return %c0_i32, %c0_i32_0 : i32, i32
  }
  func.func @transform_20(%arg0: i32) -> (i32, i32, i32) {
    %c0_i32 = arith.constant 0 : i32
    %c0_i32_0 = arith.constant 0 : i32
    %c0_i32_1 = arith.constant 0 : i32
    return %arg0, %c0_i32, %c0_i32_0 : i32, i32, i32
  }
}

</mosaic_0001>

<bundles_post_ra>
// kernel: encoder_forward.1
= control target key start
LH: loop header
LB: loop body
LE: loop exit
PB: predicated region body
PF: predicated region fallthrough
CT: control target
= control target key end

     0   :  { %s4540_s0 = inlined_call_operand.hbm [shape: f32[16,32], index: 0, kind: input, shape index: {}]   ;;  %s4541_s1 = inlined_call_operand.hbm [shape: f32[32,32], index: 1, kind: input, shape index: {}]   ;;  %s4542_s2 = inlined_call_operand.hbm [shape: f32[32,32], index: 2, kind: input, shape index: {}]   ;;  %s4543_s3 = inlined_call_operand.vmem [shape: f32[2,32,32], index: 3, kind: input, shape index: {}]   ;;  %s4544_s4 = inlined_call_operand.hbm [shape: f32[2,1,32], index: 4, kind: input, shape index: {}]   ;;  %s4545_s5 = inlined_call_operand.vmem [shape: f32[2,32,32], index: 5, kind: input, shape index: {}]   ;;  %s4546_s6 = inlined_call_operand.hbm [shape: f32[2,1,32], index: 6, kind: input, shape index: {}]   ;;  %s4547_s7 = inlined_call_operand.vmem [shape: f32[2,32,32], index: 7, kind: input, shape index: {}]   ;;  %s4548_s8 = inlined_call_operand.hbm [shape: f32[2,1,32], index: 8, kind: input, shape index: {}]   ;;  %s4549_s9 = inlined_call_operand.vmem [shape: f32[2,32,32], index: 9, kind: input, shape index: {}]   ;;  %s4550_s10 = inlined_call_operand.hbm [shape: f32[2,1,32], index: 10, kind: input, shape index: {}]   ;;  %s4551_s11 = inlined_call_operand.hbm [shape: f32[2,1,32], index: 11, kind: input, shape index: {}]   ;;  %s4552_s12 = inlined_call_operand.hbm [shape: f32[2,1,32], index: 12, kind: input, shape index: {}]   ;;  %s4553_s13 = inlined_call_operand.hbm [shape: f32[2,32,64], index: 13, kind: input, shape index: {}]   ;;  %s4554_s14 = inlined_call_operand.hbm [shape: f32[2,1,64], index: 14, kind: input, shape index: {}]   ;;  %s4555_s15 = inlined_call_operand.vmem [shape: f32[2,64,32], index: 15, kind: input, shape index: {}]   ;;  %s4556_s16 = inlined_call_operand.hbm [shape: f32[2,1,32], index: 16, kind: input, shape index: {}]   ;;  %s4557_s17 = inlined_call_operand.hbm [shape: f32[2,1,32], index: 17, kind: input, shape index: {}]   ;;  %s4558_s18 = inlined_call_operand.hbm [shape: f32[2,1,32], index: 18, kind: input, shape index: {}]   ;;  %s4559_s19 = inlined_call_operand.hbm [shape: f32[16,32], index: 19, kind: output, shape index: {0}]   ;;  %s4560_s20 = inlined_call_operand.vmem [shape: f32[2,16,32], index: 20, kind: output, shape index: {1}]  }
   0x1   :  { %4596 = sst [smem:[#allocation43_spill]] %s4540_s0 }
   0x2   :  { %4597 = sst [smem:[#allocation44_spill]] %s4541_s1 }
   0x3   :  { %4598 = sst [smem:[#allocation45_spill]] %s4542_s2 }
   0x4   :  { %4599 = sst [smem:[#allocation46_spill]] %s4543_s3 }
   0x5   :  { %4600 = sst [smem:[#allocation47_spill]] %s4544_s4 }
   0x6   :  { %4601 = sst [smem:[#allocation48_spill]] %s4545_s5 }
   0x7   :  { %4602 = sst [smem:[#allocation49_spill]] %s4546_s6 }
   0x8   :  { %4603 = sst [smem:[#allocation50_spill]] %s4547_s7 }
   0x9   :  { %4604 = sst [smem:[#allocation51_spill]] %s4548_s8 }
   0xa   :  { %4605 = sst [smem:[#allocation52_spill]] %s4549_s9 }
   0xb   :  { %4606 = sst [smem:[#allocation53_spill]] %s4550_s10 }
   0xc   :  { %4607 = sst [smem:[#allocation54_spill]] %s4551_s11 }
   0xd   :  { %4608 = sst [smem:[#allocation55_spill]] %s4553_s13 }
   0xe   :  { %4609 = sst [smem:[#allocation56_spill]] %s4555_s15 }
   0xf   :  { %4610 = sst [smem:[#allocation57_spill]] %s4556_s16 }
  0x10   :  { %4611 = sst [smem:[#allocation58_spill]] %s4559_s19 }
  0x11   :  { %4612 = sst [smem:[#allocation59_spill]] %s4560_s20 }
  0x12   :  { %26 = vsyncpa [#allocation4], 0 }
  0x13   :  { %27 = vsyncpa [#allocation7], 0 }
  0x14   :  { %28 = vsyncpa [#allocation10], 0 }
  0x15   :  { %30 = vsyncpa [#allocation10 + $0x1], 0 }
  0x16   :  { %31 = vsyncpa [#allocation13], 0 }
  0x17   :  { %33 = vsyncpa [#allocation13 + $0x1], 0 }
  0x18   :  { %34 = vsyncpa [#allocation16], 0 }
  0x19   :  { %36 = vsyncpa [#allocation16 + $0x1], 0 }
  0x1a   :  { %37 = vsyncpa [#allocation19], 0 }
  0x1b   :  { %39 = vsyncpa [#allocation19 + $0x1], 0 }
  0x1c   :  { %40 = vsyncpa [#allocation22], 0 }
  0x1d   :  { %42 = vsyncpa [#allocation22 + $0x1], 0 }
  0x1e   :  { %43 = vsyncpa [#allocation25], 0 }
  0x1f   :  { %45 = vsyncpa [#allocation25 + $0x1], 0 }
  0x20   :  { %46 = vsyncpa [#allocation5], 0  ;;  %s3824_s1 = smov 0   ;;  %s3826_s22 = smov 0  }
  0x21   :  { %s3828_s23 = smov 0   ;;  %s3830_s24 = smov 0  }
  0x22 LB: > { %4613 = sst [smem:[#allocation36_spill]] %s3687_s22  ;;  %s3843_s2 = sadd.s32 4294967295, %s3695_s24   ;;  %s3695_s24 = sphi %s3830_s24, %s4691_s24   ;;  %s3691_s23 = sphi %s3828_s23, %s4694_s23   ;;  %s3687_s22 = sphi %s3826_s22, %s4693_s22   ;;  %s3683_s1 = sphi %s3824_s1, %s4692_s1  }
  0x23   : > { %4614 = sst [smem:[#allocation37_spill]] %s3691_s23  ;;  %s3846_s25 = sadd.s32 1, %s3695_s24  }
  0x24   : > { %4615 = sst [smem:[#allocation38_spill]] %s3843_s2  ;;  %s145_s3 = ssub.s32 %s3695_s24, %s3846_s25 }
  0x25   : > { %4616 = sst [smem:[#allocation39_spill]] %s3846_s25  ;;  %s148_s26 = sadd.s32 1, %s3691_s23 }
  0x26   : > { %p146_p0 = scmp.eq.s32.totalorder %s145_s3, 0  ;;  %p155_p1 = scmp.ne.s32.totalorder %s3691_s23, %s3687_s22 }
  0x27   : > { %p156_p2 = scmp.eq.s32.totalorder %s3695_s24, 0  ;;  %p161_p3 = scmp.ne.s32.totalorder %s3687_s22, %s3683_s1 }
  0x28   : > { %s3856_s27 = scalar_select %p146_p0, %s3691_s23, %s148_s26  }
  0x29   : > { %p3858_p4 = por %p156_p2, %p155_p1  ;;  %p4569_p5 = scmp.eq.s32.totalorder %s3843_s2, 0 }
  0x2a   : > { %4617 = sst [smem:[#allocation40_spill]] %s3856_s27  ;;  %p2650_p6 = scmp.ge.s32.totalorder %s3695_s24, 1 }
  0x2b   : > { %p583_p7 = scmp.lt.s32.totalorder %s3695_s24, 3  ;;  %p3867_p8 = por %p4569_p5, %p161_p3 }
  0x2c   : > { %s3697_s30 = smov [#allocation6]   ;;  %p3124_p13 = scmp.lt.s32.totalorder %s3695_s24, 2 }
  0x2d   : > { %s4619_s4 = scalar_select %p3867_p8, 1, 0 }
  0x2e   : > { %p3872_p10 = pnand %p2650_p6, %p583_p7  ;;  %s608_s0 = sshll.u32 %s3697_s30, 4  ;;  %s609_s0 = int_to_ptr.vmem [resolvable:$true] %s608_s0 }
  0x2f   : > { %4620 = sst [smem:[#allocation41_spill]] %s4619_s4  ;;  %s3886_s1 = sand.u32 1, %s3691_s23  }
  0x30   : > { %s4621_s29 = scalar_select %p3872_p10, 1, 0 }
  0x31   : > { %p3077_p11 = pneg %p3872_p10  ;;  %s3889_s3 = sand.u32 1, %s3695_s24  }
  0x32   : > { %4622 = sst [smem:[#allocation42_spill]] %s4621_s29  ;;  %p3893_p0 = pnand %p3124_p13, %p3858_p4 }
  0x33   : > { %p3880_p12 = pnand %p3077_p11, %p4569_p5  ;;  %s4625_s30 = sld [smem:[#allocation44_spill]] }
  0x34   : > { %s4624_s26 = scalar_select %p3893_p0, 1, 0 }
  0x35   : > { %s4623_s21 = scalar_select %p3880_p12, 1, 0 }
  0x36   : > { %p3905_p2 = pneg %p3880_p12 }
  0x38   : > { %s4626_s9 = scalar_select %p3905_p2, 1, 0 }
  0x39   : > { %s3189_s19 = scalar_lea.hbm %s4625_s30, 512 }
  0x3a   : > { %p3190_p1 = scmp.ne.s32.totalorder %s4625_s30, %s3189_s19  ;;  %p3196_p6 = scmp.lt.u32.totalorder %s3189_s19, %s4625_s30 }
  0x3c   : > { %p3192_p3 = pnand %p3905_p2, %p3190_p1 }
  0x3e   : > { %p3193_p4 = pneg %p3192_p3 }
  0x40   : > { %p3198_p7 = pnand %p3196_p6, %p3193_p4 }
  0x42   : > { %3201 = shalt.err (!%p3198_p7)
}
  0x43   : > { %s3202_s25 = scalar_lea.vmem %s609_s0, 512  ;;  %p3210_p5 = scmp.lt.s32.totalorder %s609_s0, %s609_s0 }
  0x44   : > { %p3203_p11 = scmp.ne.s32.totalorder %s609_s0, %s3202_s25  ;;  %p3211_p8 = scmp.lt.s32.totalorder %s3202_s25, %s3202_s25 }
  0x46   : > { %p3205_p13 = pnand %p3203_p11, %p3905_p2  ;;  %p3212_p10 = por %p3211_p8, %p3210_p5 }
  0x48   : > { %p3206_p9 = pneg %p3205_p13 }
  0x4a   : > { %p3213_p0 = pnand %p3212_p10, %p3206_p9 }
  0x4c   : > { %3216 = shalt.err (!%p3213_p0)
}
  0x4d   : > { %s4580_s15 = smov 128   ;;  %s4586_s19 = smov 8  }
  0x4e   : > { %3083 = dma.hbm_to_vmem [thread:$0]  (!%p3880_p12), %s4625_s30, 512, %s609_s0, [#allocation7], %s4580_s15, %s4580_s15, %s4586_s19  }
  0x4f   : > { %s3925_s27 = sshll.u32 %s3695_s24, 4  ;;  %s4627_s7 = sld [smem:[#allocation47_spill]] }
  0x50   : > { %s646_s4 = scalar_lea.vmem [#allocation9], %s3886_s1  ;;  %s4588_s2 = scalar_lea.sflag [#allocation10], %s3889_s3 }
  0x51   : > { %s653_s22 = sshll.u32 %s646_s4, 4  ;;  %p4628_p8 = scmp.ne.s32.totalorder %s4624_s26, 0  ;;  %s3934_s22 = int_to_ptr.vmem [resolvable:$true] %s653_s22 }
  0x53   : > { %p3941_p9 = pneg %p4628_p8 }
  0x55   : > { %s3931_s5 = scalar_lea.hbm %s4627_s7, %s3925_s27  ;;  %s3222_s28 = scalar_lea.hbm %s4627_s7, 32 }
  0x56   : > { %s3217_s29 = scalar_lea.hbm %s3931_s5, 16  ;;  %p3223_p1 = scmp.lt.u32.totalorder %s3931_s5, %s4627_s7 }
  0x57   : > { %p3218_p5 = scmp.ne.s32.totalorder %s3931_s5, %s3217_s29  ;;  %p3224_p3 = scmp.lt.u32.totalorder %s3222_s28, %s3217_s29 }
  0x58   : > { %s4629_s0 = scalar_select %p3941_p9, 1, 0 }
  0x59   : > { %p3220_p10 = pnand %p3941_p9, %p3218_p5  ;;  %p3225_p4 = por %p3224_p3, %p3223_p1 }
  0x5a   : > { %p3226_p6 = scmp.lt.u32.totalorder %s3217_s29, %s3931_s5 }
  0x5b   : > { %p3221_p0 = pneg %p3220_p10 }
  0x5c   : > { %p3227_p7 = por %p3226_p6, %p3225_p4 }
  0x5e   : > { %p3228_p11 = pnand %p3227_p7, %p3221_p0 }
  0x60   : > { %3231 = shalt.err (!%p3228_p11)
}
  0x61   : > { %s3232_s15 = scalar_lea.vmem %s3934_s22, 16  ;;  %s3700_s20 = smov [#allocation9]  }
  0x62   : > { %p3233_p13 = scmp.ne.s32.totalorder %s3934_s22, %s3232_s15  ;;  %s3237_s23 = sshll.u32 %s3700_s20, 4  ;;  %s3238_s23 = int_to_ptr.vmem [resolvable:$false] %s3237_s23 }
  0x63   : > { %s3239_s25 = scalar_lea.vmem %s3238_s23, 32  ;;  %p3240_p12 = scmp.lt.s32.totalorder %s3934_s22, %s3238_s23 }
  0x64   : > { %p3235_p5 = pnand %p3233_p13, %p3941_p9  ;;  %p3241_p2 = scmp.lt.s32.totalorder %s3239_s25, %s3232_s15 }
  0x66   : > { %p3236_p10 = pneg %p3235_p5  ;;  %p3242_p1 = por %p3241_p2, %p3240_p12 }
  0x68   : > { %p3243_p3 = pnand %p3242_p1, %p3236_p10 }
  0x6a   : > { %3246 = shalt.err (!%p3243_p3)
}
  0x6b   : > { %3090 = dma.hbm_to_vmem [thread:$0]  (!%p4628_p8), %s3931_s5, 16, %s3934_s22, %s4588_s2  }
  0x6c   : > { %s4630_s8 = sld [smem:[#allocation51_spill]]  ;;  %s696_s15 = scalar_lea.vmem [#allocation12], %s3886_s1 }
  0x6d   : > { %s703_s20 = sshll.u32 %s696_s15, 4  ;;  %s704_s20 = int_to_ptr.vmem [resolvable:$true] %s703_s20 }
  0x72   : > { %s3970_s4 = scalar_lea.hbm %s4630_s8, %s3925_s27  ;;  %s3252_s22 = scalar_lea.hbm %s4630_s8, 32 }
  0x73   : > { %s3247_s25 = scalar_lea.hbm %s3970_s4, 16  ;;  %p3253_p4 = scmp.lt.u32.totalorder %s3970_s4, %s4630_s8 }
  0x74   : > { %p3248_p12 = scmp.ne.s32.totalorder %s3970_s4, %s3247_s25  ;;  %p3254_p6 = scmp.lt.u32.totalorder %s3252_s22, %s3247_s25 }
  0x75   : > { %p3256_p11 = scmp.lt.u32.totalorder %s3247_s25, %s3970_s4 }
  0x76   : > { %p3250_p2 = pnand %p3248_p12, %p3941_p9  ;;  %p3255_p7 = por %p3254_p6, %p3253_p4 }
  0x78   : > { %p3251_p0 = pneg %p3250_p2  ;;  %p3257_p13 = por %p3256_p11, %p3255_p7 }
  0x7a   : > { %p3258_p5 = pnand %p3257_p13, %p3251_p0 }
  0x7c   : > { %3261 = shalt.err (!%p3258_p5)
}
  0x7d   : > { %s3262_s15 = scalar_lea.vmem %s704_s20, 16  ;;  %s3701_s2 = smov [#allocation12]  }
  0x7e   : > { %p3263_p10 = scmp.ne.s32.totalorder %s704_s20, %s3262_s15  ;;  %s3267_s23 = sshll.u32 %s3701_s2, 4  ;;  %s3268_s23 = int_to_ptr.vmem [resolvable:$false] %s3267_s23 }
  0x7f   : > { %s3269_s19 = scalar_lea.vmem %s3268_s23, 32  ;;  %p3270_p12 = scmp.lt.s32.totalorder %s704_s20, %s3268_s23 }
  0x80   : > { %p3265_p1 = pnand %p3263_p10, %p3941_p9  ;;  %p3271_p2 = scmp.lt.s32.totalorder %s3269_s19, %s3262_s15 }
  0x82   : > { %p3266_p3 = pneg %p3265_p1  ;;  %p3272_p8 = por %p3271_p2, %p3270_p12 }
  0x84   : > { %p3273_p4 = pnand %p3272_p8, %p3266_p3 }
  0x86   : > { %3276 = shalt.err (!%p3273_p4)
}
  0x87   : > { %p4631_p6 = scmp.ne.s32.totalorder %s4624_s26, 0  ;;  %s4632_s25 = scalar_lea.sflag [#allocation13], %s3889_s3 }
  0x88   : > { %s4633_s11 = sld [smem:[#allocation54_spill]]  ;;  %s738_s23 = scalar_lea.vmem [#allocation15], %s3886_s1 }
  0x89   : > { %3096 = dma.hbm_to_vmem [thread:$0]  (!%p4631_p6), %s3970_s4, 16, %s704_s20, %s4632_s25  }
  0x8a   : > { %s745_s29 = sshll.u32 %s738_s23, 4  ;;  %s746_s29 = int_to_ptr.vmem [resolvable:$true] %s745_s29 }
  0x8e   : > { %s3997_s2 = scalar_lea.hbm %s4633_s11, %s3925_s27  ;;  %s3282_s20 = scalar_lea.hbm %s4633_s11, 32 }
  0x8f   : > { %s3277_s15 = scalar_lea.hbm %s3997_s2, 16  ;;  %p3283_p11 = scmp.lt.u32.totalorder %s3997_s2, %s4633_s11 }
  0x90   : > { %p3278_p8 = scmp.ne.s32.totalorder %s3997_s2, %s3277_s15  ;;  %p3284_p13 = scmp.lt.u32.totalorder %s3282_s20, %s3277_s15 }
  0x91   : > { %p3286_p10 = scmp.lt.u32.totalorder %s3277_s15, %s3997_s2 }
  0x92   : > { %p3280_p0 = pnand %p3278_p8, %p3941_p9  ;;  %p3285_p5 = por %p3284_p13, %p3283_p11 }
  0x94   : > { %p3281_p7 = pneg %p3280_p0  ;;  %p3287_p1 = por %p3286_p10, %p3285_p5 }
  0x96   : > { %p3288_p3 = pnand %p3287_p1, %p3281_p7 }
  0x98   : > { %3291 = shalt.err (!%p3288_p3)
}
  0x99   : > { %s3292_s22 = scalar_lea.vmem %s746_s29, 16  ;;  %s3702_s23 = smov [#allocation15]  }
  0x9a   : > { %p3293_p12 = scmp.ne.s32.totalorder %s746_s29, %s3292_s22  ;;  %s3297_s28 = sshll.u32 %s3702_s23, 4  ;;  %s3298_s28 = int_to_ptr.vmem [resolvable:$false] %s3297_s28 }
  0x9b   : > { %s3299_s19 = scalar_lea.vmem %s3298_s28, 32  ;;  %p3300_p8 = scmp.lt.s32.totalorder %s746_s29, %s3298_s28 }
  0x9c   : > { %p3295_p2 = pnand %p3293_p12, %p3941_p9  ;;  %p3301_p0 = scmp.lt.s32.totalorder %s3299_s19, %s3292_s22 }
  0x9e   : > { %p3296_p4 = pneg %p3295_p2  ;;  %p3302_p6 = por %p3301_p0, %p3300_p8 }
  0xa0   : > { %p3303_p11 = pnand %p3302_p6, %p3296_p4 }
  0xa2   : > { %3306 = shalt.err (!%p3303_p11)
}
  0xa3   : > { %p4634_p13 = scmp.ne.s32.totalorder %s4624_s26, 0  ;;  %s4635_s15 = scalar_lea.sflag [#allocation16], %s3889_s3 }
  0xa4   : > { %s2661_s4 = sshll.u32 %s3886_s1, 5  ;;  %s2726_s20 = sshll.u32 %s3695_s24, 9 }
  0xa5   : > { %3102 = dma.hbm_to_vmem [thread:$0]  (!%p4634_p13), %s3997_s2, 16, %s746_s29, %s4635_s15  }
  0xa6   : > { %s4636_s13 = sld [smem:[#allocation55_spill]]  ;;  %s773_s22 = scalar_lea.vmem [#allocation18], %s2661_s4 }
  0xa7   : > { %s780_s23 = sshll.u32 %s773_s22, 4  ;;  %s4591_s19 = scalar_lea.sflag [#allocation19], %s3889_s3  ;;  %s4027_s23 = int_to_ptr.vmem [resolvable:$true] %s780_s23 }
  0xac   : > { %s4025_s28 = scalar_lea.hbm %s4636_s13, %s2726_s20  ;;  %s3312_s29 = scalar_lea.hbm %s4636_s13, 1024 }
  0xad   : > { %s3307_s7 = scalar_lea.hbm %s4025_s28, 512  ;;  %p3313_p10 = scmp.lt.u32.totalorder %s4025_s28, %s4636_s13 }
  0xae   : > { %p3308_p6 = scmp.ne.s32.totalorder %s4025_s28, %s3307_s7  ;;  %p3314_p1 = scmp.lt.u32.totalorder %s3312_s29, %s3307_s7 }
  0xaf   : > { %p3316_p12 = scmp.lt.u32.totalorder %s3307_s7, %s4025_s28 }
  0xb0   : > { %p3310_p7 = pnand %p3308_p6, %p3941_p9  ;;  %p3315_p3 = por %p3314_p1, %p3313_p10 }
  0xb2   : > { %p3311_p5 = pneg %p3310_p7  ;;  %p3317_p2 = por %p3316_p12, %p3315_p3 }
  0xb4   : > { %p3318_p4 = pnand %p3317_p2, %p3311_p5 }
  0xb6   : > { %3321 = shalt.err (!%p3318_p4)
}
  0xb7   : > { %s3322_s4 = scalar_lea.vmem %s4027_s23, 512  ;;  %s3703_s25 = smov [#allocation18]  }
  0xb8   : > { %p3323_p8 = scmp.ne.s32.totalorder %s4027_s23, %s3322_s4  ;;  %s3327_s5 = sshll.u32 %s3703_s25, 4  ;;  %s3328_s5 = int_to_ptr.vmem [resolvable:$false] %s3327_s5 }
  0xb9   : > { %s3329_s22 = scalar_lea.vmem %s3328_s5, 1024  ;;  %p3330_p6 = scmp.lt.s32.totalorder %s4027_s23, %s3328_s5 }
  0xba   : > { %p3325_p0 = pnand %p3323_p8, %p3941_p9  ;;  %p3331_p7 = scmp.lt.s32.totalorder %s3329_s22, %s3322_s4 }
  0xbc   : > { %p3326_p11 = pneg %p3325_p0  ;;  %p3332_p10 = por %p3331_p7, %p3330_p6 }
  0xbe   : > { %p3333_p1 = pnand %p3332_p10, %p3326_p11 }
  0xc0   : > { %3336 = shalt.err (!%p3333_p1)
}
  0xc1   : > { %s4637_s7 = smov 8   ;;  %s4638_s24 = smov 128  }
  0xc2   : > { %3108 = dma.hbm_to_vmem [thread:$0]  (!%p4634_p13), %s4025_s28, 512, %s4027_s23, %s4591_s19, %s4638_s24, %s4638_s24, %s4637_s7  }
  0xc3   : > { %s4639_s16 = sld [smem:[#allocation57_spill]]  ;;  %s818_s20 = scalar_lea.vmem [#allocation21], %s3886_s1 }
  0xc4   : > { %s825_s4 = sshll.u32 %s818_s20, 4  ;;  %s826_s4 = int_to_ptr.vmem [resolvable:$true] %s825_s4 }
  0xc9   : > { %s4060_s15 = scalar_lea.hbm %s4639_s16, %s3925_s27  ;;  %s3342_s23 = scalar_lea.hbm %s4639_s16, 32 }
  0xca   : > { %s3337_s5 = scalar_lea.hbm %s4060_s15, 16  ;;  %p3343_p2 = scmp.lt.u32.totalorder %s4060_s15, %s4639_s16 }
  0xcb   : > { %p3338_p5 = scmp.ne.s32.totalorder %s4060_s15, %s3337_s5  ;;  %p3344_p4 = scmp.lt.u32.totalorder %s3342_s23, %s3337_s5 }
  0xcc   : > { %p3346_p0 = scmp.lt.u32.totalorder %s3337_s5, %s4060_s15 }
  0xcd   : > { %p3340_p3 = pnand %p3338_p5, %p3941_p9  ;;  %p3345_p8 = por %p3344_p4, %p3343_p2 }
  0xcf   : > { %p3341_p12 = pneg %p3340_p3  ;;  %p3347_p11 = por %p3346_p0, %p3345_p8 }
  0xd1   : > { %p3348_p6 = pnand %p3347_p11, %p3341_p12 }
  0xd3   : > { %3351 = shalt.err (!%p3348_p6)
}
  0xd4   : > { %s3352_s20 = scalar_lea.vmem %s826_s4, 16  ;;  %s3704_s19 = smov [#allocation21]  }
  0xd5   : > { %p3353_p7 = scmp.ne.s32.totalorder %s826_s4, %s3352_s20  ;;  %s3357_s25 = sshll.u32 %s3704_s19, 4  ;;  %s3358_s25 = int_to_ptr.vmem [resolvable:$false] %s3357_s25 }
  0xd6   : > { %s3359_s22 = scalar_lea.vmem %s3358_s25, 32  ;;  %p3360_p5 = scmp.lt.s32.totalorder %s826_s4, %s3358_s25 }
  0xd7   : > { %p3355_p10 = pnand %p3353_p7, %p3941_p9  ;;  %p3361_p3 = scmp.lt.s32.totalorder %s3359_s22, %s3352_s20 }
  0xd9   : > { %p3356_p1 = pneg %p3355_p10  ;;  %p3362_p13 = por %p3361_p3, %p3360_p5 }
  0xdb   : > { %p3363_p2 = pnand %p3362_p13, %p3356_p1 }
  0xdd   : > { %3366 = shalt.err (!%p3363_p2)
}
  0xde   : > { %p4640_p4 = scmp.ne.s32.totalorder %s4624_s26, 0  ;;  %s4641_s5 = scalar_lea.sflag [#allocation22], %s3889_s3 }
  0xdf   : > { %s3705_s28 = smov [#allocation3]   ;;  %s3706_s2 = smov [#allocation8]  }
  0xe0   : > { %3114 = dma.hbm_to_vmem [thread:$0]  (!%p4640_p4), %s4060_s15, 16, %s826_s4, %s4641_s5  }
  0xe1   : > { %s595_s23 = sshll.u32 %s3705_s28, 4  ;;  %s621_s29 = sshll.u32 %s3706_s2, 4  ;;  %s596_s23 = int_to_ptr.vmem [resolvable:$true] %s595_s23  ;;  %s622_s29 = int_to_ptr.vmem [resolvable:$true] %s621_s29 }
  0xe2   : > { %s4642_s11 = sld [smem:[#allocation43_spill]]  ;;  %p4643_p12 = scmp.ne.s32.totalorder %s4626_s9, 0 }
  0xe8   : > { %s3367_s25 = scalar_lea.hbm %s4642_s11, 256 }
  0xe9   : > { %p3368_p13 = scmp.ne.s32.totalorder %s4642_s11, %s3367_s25  ;;  %p3374_p11 = scmp.lt.u32.totalorder %s3367_s25, %s4642_s11 }
  0xeb   : > { %p3370_p8 = pnand %p3368_p13, %p4643_p12 }
  0xed   : > { %p3371_p0 = pneg %p3370_p8 }
  0xef   : > { %p3376_p6 = pnand %p3374_p11, %p3371_p0 }
  0xf1   : > { %3379 = shalt.err (!%p3376_p6)
}
  0xf2   : > { %s3380_s15 = scalar_lea.vmem %s596_s23, 256  ;;  %p3388_p5 = scmp.lt.s32.totalorder %s596_s23, %s596_s23 }
  0xf3   : > { %p3381_p7 = scmp.ne.s32.totalorder %s596_s23, %s3380_s15  ;;  %p3389_p3 = scmp.lt.s32.totalorder %s3380_s15, %s3380_s15 }
  0xf5   : > { %p3383_p10 = pnand %p3381_p7, %p4643_p12  ;;  %p3390_p2 = por %p3389_p3, %p3388_p5 }
  0xf7   : > { %p3384_p1 = pneg %p3383_p10 }
  0xf9   : > { %p3391_p4 = pnand %p3390_p2, %p3384_p1 }
  0xfb   : > { %3394 = shalt.err (!%p3391_p4)
}
  0xfc   : > { %p4644_p13 = scmp.ne.s32.totalorder %s4623_s21, 0  ;;  %s4645_s5 = sld [smem:[#allocation45_spill]] }
  0xfe   : > { %3080 = dma.hbm_to_vmem [thread:$0]  (!%p4644_p13), %s4642_s11, 256, %s596_s23, [#allocation4], %s4638_s24, %s4638_s24, %s4637_s7  }
 0x102   : > { %s3395_s28 = scalar_lea.hbm %s4645_s5, 512 }
 0x103   : > { %p3396_p8 = scmp.ne.s32.totalorder %s4645_s5, %s3395_s28  ;;  %p3402_p11 = scmp.lt.u32.totalorder %s3395_s28, %s4645_s5 }
 0x105   : > { %p3398_p4 = pnand %p3396_p8, %p4643_p12 }
 0x107   : > { %p3399_p0 = pneg %p3398_p4 }
 0x109   : > { %p3404_p6 = pnand %p3402_p11, %p3399_p0 }
 0x10b   : > { %3407 = shalt.err (!%p3404_p6)
}
 0x10c   : > { %s3408_s22 = scalar_lea.vmem %s622_s29, 512  ;;  %p3416_p5 = scmp.lt.s32.totalorder %s622_s29, %s622_s29 }
 0x10d   : > { %p3409_p7 = scmp.ne.s32.totalorder %s622_s29, %s3408_s22  ;;  %p3417_p3 = scmp.lt.s32.totalorder %s3408_s22, %s3408_s22 }
 0x10f   : > { %p3411_p10 = pnand %p3409_p7, %p4643_p12  ;;  %p3418_p2 = por %p3417_p3, %p3416_p5 }
 0x111   : > { %p3412_p1 = pneg %p3411_p10 }
 0x113   : > { %p3419_p9 = pnand %p3418_p2, %p3412_p1 }
 0x115   : > { %3422 = shalt.err (!%p3419_p9)
}
 0x116   : > { %3086 = dma.hbm_to_vmem [thread:$0]  (!%p4644_p13), %s4645_s5, 512, %s622_s29, [#allocation7], %s4638_s24, %s4638_s24, %s4637_s7  }
 0x117   : > { %s4646_s6 = sld [smem:[#allocation49_spill]]  ;;  %s671_s21 = scalar_lea.vmem [#allocation11], %s3886_s1 }
 0x118   : > { %s678_s16 = sshll.u32 %s671_s21, 4  ;;  %p4647_p12 = scmp.ne.s32.totalorder %s4629_s0, 0  ;;  %s679_s16 = int_to_ptr.vmem [resolvable:$true] %s678_s16 }
 0x11d   : > { %s4129_s13 = scalar_lea.hbm %s4646_s6, %s3925_s27  ;;  %s3428_s7 = scalar_lea.hbm %s4646_s6, 32 }
 0x11e   : > { %s3423_s4 = scalar_lea.hbm %s4129_s13, 16  ;;  %p3429_p13 = scmp.lt.u32.totalorder %s4129_s13, %s4646_s6 }
 0x11f   : > { %p3424_p9 = scmp.ne.s32.totalorder %s4129_s13, %s3423_s4  ;;  %p3430_p0 = scmp.lt.u32.totalorder %s3428_s7, %s3423_s4 }
 0x120   : > { %p3432_p6 = scmp.lt.u32.totalorder %s3423_s4, %s4129_s13 }
 0x121   : > { %p3426_p8 = pnand %p3424_p9, %p4647_p12  ;;  %p3431_p11 = por %p3430_p0, %p3429_p13 }
 0x123   : > { %p3427_p4 = pneg %p3426_p8  ;;  %p3433_p7 = por %p3432_p6, %p3431_p11 }
 0x125   : > { %p3434_p10 = pnand %p3433_p7, %p3427_p4 }
 0x127   : > { %3437 = shalt.err (!%p3434_p10)
}
 0x128   : > { %s3438_s19 = scalar_lea.vmem %s679_s16, 16  ;;  %s3707_s25 = smov [#allocation11]  }
 0x129   : > { %p3439_p1 = scmp.ne.s32.totalorder %s679_s16, %s3438_s19  ;;  %s3443_s20 = sshll.u32 %s3707_s25, 4  ;;  %s3444_s20 = int_to_ptr.vmem [resolvable:$false] %s3443_s20 }
 0x12a   : > { %s3445_s22 = scalar_lea.vmem %s3444_s20, 32  ;;  %p3446_p2 = scmp.lt.s32.totalorder %s679_s16, %s3444_s20 }
 0x12b   : > { %p3441_p5 = pnand %p3439_p1, %p4647_p12  ;;  %p3447_p9 = scmp.lt.s32.totalorder %s3445_s22, %s3438_s19 }
 0x12d   : > { %p3442_p3 = pneg %p3441_p5  ;;  %p3448_p8 = por %p3447_p9, %p3446_p2 }
 0x12f   : > { %p3449_p0 = pnand %p3448_p8, %p3442_p3 }
 0x131   : > { %3452 = shalt.err (!%p3449_p0)
}
 0x132   : > { %p4648_p13 = scmp.ne.s32.totalorder %s4624_s26, 0  ;;  %s4649_s23 = scalar_lea.sflag [#allocation10], %s3889_s3 }
 0x133   : > { %s4650_s10 = sld [smem:[#allocation53_spill]]  ;;  %s721_s21 = scalar_lea.vmem [#allocation14], %s3886_s1 }
 0x134   : > { %3093 = dma.hbm_to_vmem [thread:$0]  (!%p4648_p13), %s4129_s13, 16, %s679_s16, %s4649_s23  }
 0x135   : > { %s728_s4 = sshll.u32 %s721_s21, 4  ;;  %s729_s4 = int_to_ptr.vmem [resolvable:$true] %s728_s4 }
 0x139   : > { %s4155_s8 = scalar_lea.hbm %s4650_s10, %s3925_s27  ;;  %s3458_s13 = scalar_lea.hbm %s4650_s10, 32 }
 0x13a   : > { %s3453_s28 = scalar_lea.hbm %s4155_s8, 16  ;;  %p3459_p7 = scmp.lt.u32.totalorder %s4155_s8, %s4650_s10 }
 0x13b   : > { %p3454_p4 = scmp.ne.s32.totalorder %s4155_s8, %s3453_s28  ;;  %p3460_p10 = scmp.lt.u32.totalorder %s3458_s13, %s3453_s28 }
 0x13c   : > { %p3462_p5 = scmp.lt.u32.totalorder %s3453_s28, %s4155_s8 }
 0x13d   : > { %p3456_p11 = pnand %p3454_p4, %p4647_p12  ;;  %p3461_p1 = por %p3460_p10, %p3459_p7 }
 0x13f   : > { %p3457_p6 = pneg %p3456_p11  ;;  %p3463_p3 = por %p3462_p5, %p3461_p1 }
 0x141   : > { %p3464_p2 = pnand %p3463_p3, %p3457_p6 }
 0x143   : > { %3467 = shalt.err (!%p3464_p2)
}
 0x144   : > { %s3468_s29 = scalar_lea.vmem %s729_s4, 16  ;;  %s3708_s19 = smov [#allocation14]  }
 0x145   : > { %p3469_p9 = scmp.ne.s32.totalorder %s729_s4, %s3468_s29  ;;  %s3473_s25 = sshll.u32 %s3708_s19, 4  ;;  %s3474_s25 = int_to_ptr.vmem [resolvable:$false] %s3473_s25 }
 0x146   : > { %s3475_s20 = scalar_lea.vmem %s3474_s25, 32  ;;  %p3476_p4 = scmp.lt.s32.totalorder %s729_s4, %s3474_s25 }
 0x147   : > { %p3471_p8 = pnand %p3469_p9, %p4647_p12  ;;  %p3477_p11 = scmp.lt.s32.totalorder %s3475_s20, %s3468_s29 }
 0x149   : > { %p3472_p0 = pneg %p3471_p8  ;;  %p3478_p13 = por %p3477_p11, %p3476_p4 }
 0x14b   : > { %p3479_p7 = pnand %p3478_p13, %p3472_p0 }
 0x14d   : > { %3482 = shalt.err (!%p3479_p7)
}
 0x14e   : > { %p4651_p10 = scmp.ne.s32.totalorder %s4624_s26, 0  ;;  %s4652_s22 = scalar_lea.sflag [#allocation13], %s3889_s3 }
 0x14f   : > { %s4181_s9 = scalar_lea.hbm %s4552_s12, %s3925_s27  ;;  %s755_s21 = scalar_lea.vmem [#allocation17], %s3886_s1 }
 0x150   : > { %3099 = dma.hbm_to_vmem [thread:$0]  (!%p4651_p10), %s4155_s8, 16, %s729_s4, %s4652_s22  }
 0x151   : > { %s762_s28 = sshll.u32 %s755_s21, 4  ;;  %s3483_s2 = scalar_lea.hbm %s4181_s9, 16  ;;  %s763_s28 = int_to_ptr.vmem [resolvable:$true] %s762_s28 }
 0x152   : > { %p3484_p13 = scmp.ne.s32.totalorder %s4181_s9, %s3483_s2  ;;  %s3488_s8 = scalar_lea.hbm %s4552_s12, 32 }
 0x153   : > { %p3489_p5 = scmp.lt.u32.totalorder %s4181_s9, %s4552_s12  ;;  %p3490_p3 = scmp.lt.u32.totalorder %s3488_s8, %s3483_s2 }
 0x154   : > { %p3486_p6 = pnand %p3484_p13, %p4647_p12  ;;  %p3492_p9 = scmp.lt.u32.totalorder %s3483_s2, %s4181_s9 }
 0x155   : > { %p3491_p2 = por %p3490_p3, %p3489_p5 }
 0x156   : > { %p3487_p1 = pneg %p3486_p6 }
 0x157   : > { %p3493_p8 = por %p3492_p9, %p3491_p2 }
 0x159   : > { %p3494_p0 = pnand %p3493_p8, %p3487_p1 }
 0x15b   : > { %3497 = shalt.err (!%p3494_p0)
}
 0x15c   : > { %s3498_s24 = scalar_lea.vmem %s763_s28, 16  ;;  %s3709_s29 = smov [#allocation17]  }
 0x15d   : > { %p3499_p4 = scmp.ne.s32.totalorder %s763_s28, %s3498_s24  ;;  %s3503_s19 = sshll.u32 %s3709_s29, 4  ;;  %s3504_s19 = int_to_ptr.vmem [resolvable:$false] %s3503_s19 }
 0x15e   : > { %s3505_s25 = scalar_lea.vmem %s3504_s19, 32  ;;  %p3506_p13 = scmp.lt.s32.totalorder %s763_s28, %s3504_s19 }
 0x15f   : > { %p3501_p11 = pnand %p3499_p4, %p4647_p12  ;;  %p3507_p6 = scmp.lt.s32.totalorder %s3505_s25, %s3498_s24 }
 0x161   : > { %p3502_p7 = pneg %p3501_p11  ;;  %p3508_p10 = por %p3507_p6, %p3506_p13 }
 0x163   : > { %p3509_p3 = pnand %p3508_p10, %p3502_p7 }
 0x165   : > { %3512 = shalt.err (!%p3509_p3)
}
 0x166   : > { %p4653_p5 = scmp.ne.s32.totalorder %s4624_s26, 0  ;;  %s4654_s20 = scalar_lea.sflag [#allocation16], %s3889_s3 }
 0x167   : > { %s4207_s15 = scalar_lea.hbm %s4554_s14, %s3925_s27  ;;  %s793_s21 = scalar_lea.vmem [#allocation20], %s3886_s1 }
 0x168   : > { %3105 = dma.hbm_to_vmem [thread:$0]  (!%p4653_p5), %s4181_s9, 16, %s763_s28, %s4654_s20  }
 0x169   : > { %s800_s2 = sshll.u32 %s793_s21, 4  ;;  %s3513_s7 = scalar_lea.hbm %s4207_s15, 16  ;;  %s801_s2 = int_to_ptr.vmem [resolvable:$true] %s800_s2 }
 0x16a   : > { %p3514_p10 = scmp.ne.s32.totalorder %s4207_s15, %s3513_s7  ;;  %s3518_s9 = scalar_lea.hbm %s4554_s14, 32 }
 0x16b   : > { %p3519_p9 = scmp.lt.u32.totalorder %s4207_s15, %s4554_s14  ;;  %p3520_p8 = scmp.lt.u32.totalorder %s3518_s9, %s3513_s7 }
 0x16c   : > { %p3516_p1 = pnand %p3514_p10, %p4647_p12  ;;  %p3522_p4 = scmp.lt.u32.totalorder %s3513_s7, %s4207_s15 }
 0x16d   : > { %p3521_p0 = por %p3520_p8, %p3519_p9 }
 0x16e   : > { %p3517_p2 = pneg %p3516_p1 }
 0x16f   : > { %p3523_p11 = por %p3522_p4, %p3521_p0 }
 0x171   : > { %p3524_p7 = pnand %p3523_p11, %p3517_p2 }
 0x173   : > { %3527 = shalt.err (!%p3524_p7)
}
 0x174   : > { %s3528_s16 = scalar_lea.vmem %s801_s2, 16  ;;  %s3710_s24 = smov [#allocation20]  }
 0x175   : > { %p3529_p13 = scmp.ne.s32.totalorder %s801_s2, %s3528_s16  ;;  %s3533_s29 = sshll.u32 %s3710_s24, 4  ;;  %s3534_s29 = int_to_ptr.vmem [resolvable:$false] %s3533_s29 }
 0x176   : > { %s3535_s19 = scalar_lea.vmem %s3534_s29, 32  ;;  %p3536_p10 = scmp.lt.s32.totalorder %s801_s2, %s3534_s29 }
 0x177   : > { %p3531_p6 = pnand %p3529_p13, %p4647_p12  ;;  %p3537_p1 = scmp.lt.s32.totalorder %s3535_s19, %s3528_s16 }
 0x179   : > { %p3532_p3 = pneg %p3531_p6  ;;  %p3538_p5 = por %p3537_p1, %p3536_p10 }
 0x17b   : > { %p3539_p8 = pnand %p3538_p5, %p3532_p3 }
 0x17d   : > { %3542 = shalt.err (!%p3539_p8)
}
 0x17e   : > { %p4655_p9 = scmp.ne.s32.totalorder %s4624_s26, 0  ;;  %s4656_s25 = scalar_lea.sflag [#allocation19], %s3889_s3 }
 0x17f   : > { %s4233_s23 = scalar_lea.hbm %s4557_s17, %s3925_s27  ;;  %s835_s21 = scalar_lea.vmem [#allocation23], %s3886_s1 }
 0x180   : > { %3111 = dma.hbm_to_vmem [thread:$0]  (!%p4655_p9), %s4207_s15, 16, %s801_s2, %s4656_s25  }
 0x181   : > { %s842_s7 = sshll.u32 %s835_s21, 4  ;;  %s3543_s13 = scalar_lea.hbm %s4233_s23, 16  ;;  %s843_s7 = int_to_ptr.vmem [resolvable:$true] %s842_s7 }
 0x182   : > { %p3544_p5 = scmp.ne.s32.totalorder %s4233_s23, %s3543_s13  ;;  %s3548_s15 = scalar_lea.hbm %s4557_s17, 32 }
 0x183   : > { %p3549_p4 = scmp.lt.u32.totalorder %s4233_s23, %s4557_s17  ;;  %p3550_p11 = scmp.lt.u32.totalorder %s3548_s15, %s3543_s13 }
 0x184   : > { %p3546_p2 = pnand %p3544_p5, %p4647_p12  ;;  %p3552_p13 = scmp.lt.u32.totalorder %s3543_s13, %s4233_s23 }
 0x185   : > { %p3551_p7 = por %p3550_p11, %p3549_p4 }
 0x186   : > { %p3547_p0 = pneg %p3546_p2 }
 0x187   : > { %p3553_p6 = por %p3552_p13, %p3551_p7 }
 0x189   : > { %p3554_p3 = pnand %p3553_p6, %p3547_p0 }
 0x18b   : > { %3557 = shalt.err (!%p3554_p3)
}
 0x18c   : > { %s3558_s4 = scalar_lea.vmem %s843_s7, 16  ;;  %s3711_s16 = smov [#allocation23]  }
 0x18d   : > { %p3559_p10 = scmp.ne.s32.totalorder %s843_s7, %s3558_s4  ;;  %s3563_s24 = sshll.u32 %s3711_s16, 4  ;;  %s3564_s24 = int_to_ptr.vmem [resolvable:$false] %s3563_s24 }
 0x18e   : > { %s3565_s29 = scalar_lea.vmem %s3564_s24, 32  ;;  %p3566_p5 = scmp.lt.s32.totalorder %s843_s7, %s3564_s24 }
 0x18f   : > { %p3561_p1 = pnand %p3559_p10, %p4647_p12  ;;  %p3567_p2 = scmp.lt.s32.totalorder %s3565_s29, %s3558_s4 }
 0x191   : > { %p3562_p8 = pneg %p3561_p1  ;;  %p3568_p9 = por %p3567_p2, %p3566_p5 }
 0x193   : > { %p3569_p4 = pnand %p3568_p9, %p3562_p8 }
 0x195   : > { %3572 = shalt.err (!%p3569_p4)
}
 0x196   : > { %p4657_p11 = scmp.ne.s32.totalorder %s4624_s26, 0  ;;  %s4658_s19 = scalar_lea.sflag [#allocation22], %s3889_s3 }
 0x197   : > { %s4259_s22 = scalar_lea.hbm %s4558_s18, %s3925_s27  ;;  %s852_s21 = scalar_lea.vmem [#allocation24], %s3886_s1 }
 0x198   : > { %3117 = dma.hbm_to_vmem [thread:$0]  (!%p4657_p11), %s4233_s23, 16, %s843_s7, %s4658_s19  }
 0x199   : > { %s859_s13 = sshll.u32 %s852_s21, 4  ;;  %s850_s8 = scalar_lea.sflag [#allocation25], %s3886_s1  ;;  %s860_s13 = int_to_ptr.vmem [resolvable:$true] %s859_s13 }
 0x19a   : > { %s3573_s3 = scalar_lea.hbm %s4259_s22, 16  ;;  %s3578_s7 = scalar_lea.hbm %s4558_s18, 32 }
 0x19b   : > { %p3574_p9 = scmp.ne.s32.totalorder %s4259_s22, %s3573_s3  ;;  %p3579_p13 = scmp.lt.u32.totalorder %s4259_s22, %s4558_s18 }
 0x19c   : > { %p3580_p6 = scmp.lt.u32.totalorder %s3578_s7, %s3573_s3  ;;  %p3582_p10 = scmp.lt.u32.totalorder %s3573_s3, %s4259_s22 }
 0x19d   : > { %p3576_p0 = pnand %p3574_p9, %p4647_p12 }
 0x19e   : > { %p3581_p3 = por %p3580_p6, %p3579_p13 }
 0x19f   : > { %p3577_p7 = pneg %p3576_p0 }
 0x1a0   : > { %p3583_p1 = por %p3582_p10, %p3581_p3 }
 0x1a2   : > { %p3584_p8 = pnand %p3583_p1, %p3577_p7 }
 0x1a4   : > { %3587 = shalt.err (!%p3584_p8)
}
 0x1a5   : > { %s3588_s1 = scalar_lea.vmem %s860_s13, 16  ;;  %s3712_s2 = smov [#allocation24]  }
 0x1a6   : > { %p3589_p5 = scmp.ne.s32.totalorder %s860_s13, %s3588_s1  ;;  %s3593_s28 = sshll.u32 %s3712_s2, 4  ;;  %s3594_s28 = int_to_ptr.vmem [resolvable:$false] %s3593_s28 }
 0x1a7   : > { %s3595_s4 = scalar_lea.vmem %s3594_s28, 32  ;;  %p3596_p9 = scmp.lt.s32.totalorder %s860_s13, %s3594_s28 }
 0x1a8   : > { %p3591_p2 = pnand %p3589_p5, %p4647_p12  ;;  %p3597_p0 = scmp.lt.s32.totalorder %s3595_s4, %s3588_s1 }
 0x1aa   : > { %p3592_p4 = pneg %p3591_p2  ;;  %p3598_p11 = por %p3597_p0, %p3596_p9 }
 0x1ac   : > { %p3599_p6 = pnand %p3598_p11, %p3592_p4 }
 0x1ae   : > { %3602 = shalt.err (!%p3599_p6)
}
 0x1af   : > { %p4659_p13 = scmp.ne.s32.totalorder %s4624_s26, 0  ;;  %s4660_s16 = sld [smem:[#allocation42_spill]] }
 0x1b1   : > { %3120 = dma.hbm_to_vmem [thread:$0]  (!%p4659_p13), %s4259_s22, 16, %s860_s13, %s850_s8  }
 0x1b5   : > { %p4661_p7 = scmp.ne.s32.totalorder %s4660_s16, 0 }
 0x1b6   : > { %s4662_s24 = sld [smem:[#allocation38_spill]] (!%p4661_p7) }
 0x1b7   : > { %868 = sbr.rel (%p4661_p7) target bundleno = 3076 (0xc04), region = 96 }
 0x1bc   : > { %p4663_p3 = scmp.eq.s32.totalorder (!%p4661_p7), %s4662_s24, 0 }
 0x1be   : > { %3646 = dma.done.wait (%p4663_p3), [#allocation4], 256   ;;  %p4664_p12 = pmov %p4663_p3 }
 0x1bf   : > { %p4665_p10 = pmov %p4663_p3 }
 0x1c0   : > { %3648 = vsyncadd (%p4664_p12), [#allocation4], 4294967040 }
 0x1c1   : > { %3650 = dma.done.wait (%p4665_p10), [#allocation7], 1024   ;;  %p4666_p1 = pmov %p4663_p3 }
 0x1c2   : > { %s4667_s0 = sld [smem:[#allocation36_spill]]  ;;  %s4668_s26 = sld [smem:[#allocation41_spill]] }
 0x1c3   : > { %3652 = vsyncadd (%p4666_p1), [#allocation7], 4294966272  ;;  %s882_s29 = sand.u32 1, %s4662_s24  }
 0x1c4   : > { %s883_s25 = scalar_lea.sflag [#allocation10], %s882_s29 }
 0x1c8   : > { %s4292_s19 = sand.u32 1, %s4667_s0   ;;  %p4669_p11 = scmp.ne.s32.totalorder %s4668_s26, 0 }
 0x1ca   : > { %3654 = dma.done.wait (%p4669_p11), %s883_s25, 32  }
 0x1cb   : > { %3656 = vsyncadd (%p4669_p11), %s883_s25, 4294967264  ;;  %s899_s21 = scalar_lea.sflag [#allocation13], %s882_s29 }
 0x1cc   : > { %3658 = dma.done.wait (%p4669_p11), %s899_s21, 32  }
 0x1cd   : > { %3660 = vsyncadd (%p4669_p11), %s899_s21, 4294967264  ;;  %s915_s3 = scalar_lea.sflag [#allocation16], %s882_s29 }
 0x1ce   : > { %3662 = dma.done.wait (%p4669_p11), %s915_s3, 32  }
 0x1cf   : > { %3664 = vsyncadd (%p4669_p11), %s915_s3, 4294967264  ;;  %s2672_s23 = sshll.u32 %s4292_s19, 5  ;;  %s931_s15 = scalar_lea.sflag [#allocation19], %s882_s29 }
 0x1d0   : > { %s4313_s27 = scalar_lea.vmem [#allocation18], %s2672_s23 }
 0x1d1   : > { %3666 = dma.done.wait (%p4669_p11), %s931_s15, 528  }
 0x1d2   : > { %3668 = vsyncadd (%p4669_p11), %s931_s15, 4294966768  ;;  %s948_s2 = scalar_lea.sflag [#allocation22], %s882_s29 }
 0x1d3   : > { %3670 = dma.done.wait (%p4669_p11), %s948_s2, 32  }
 0x1d4   : > { %3672 = vsyncadd (%p4669_p11), %s948_s2, 4294967264  ;;  %s964_s16 = scalar_lea.sflag [#allocation25], %s4292_s19 }
 0x1d5   : > { %3674 = dma.done.wait (%p4669_p11), %s964_s16, 16  }
 0x1d6   : > { %3676 = vsyncadd (%p4669_p11), %s964_s16, 4294967280  ;;  %p1088_p8 = scmp.lt.s32.totalorder %s4662_s24, 1  ;;  %s4670_s15 = sld [smem:[#allocation46_spill]] }
 0x1d7   : > { %s4671_s4 = sld [smem:[#allocation48_spill]]  ;;  %s4672_s8 = sld [smem:[#allocation50_spill]] }
 0x1d8   : > { %s1089_s29 = scalar_select %p1088_p8, %s4662_s24, 1 }
 0x1d9   : > { %s4673_s22 = sld [smem:[#allocation52_spill]]  ;;  %s4674_s10 = sld [smem:[#allocation56_spill]] }
 0x1da   : > { %s2727_s25 = sshll.u32 %s1089_s29, 5  ;;  %s2731_s21 = sshll.u32 %s1089_s29, 6 }
 0x1db   : > { %s2732_s23 = sshll.u32 %s1089_s29, 4  ;;  %s4675_s28 = sld [smem:[#allocation59_spill]] }
 0x1dc   : > { %s1092_s2 = scalar_lea.vmem %s4670_s15, %s2727_s25  ;;  %p4676_p5 = scmp.ne.s32.totalorder %s4662_s24, 0 }
 0x1dd   : > { %s4340_s7 = scalar_lea.vmem %s4671_s4, %s2727_s25  ;;  %s4345_s26 = scalar_lea.vmem %s4672_s8, %s2727_s25  ;;  %v1122_v0 = vld [vmem:[#allocation3] sm:$0xff] (!%p4676_p5)  ;;  %vm1124_vm0 = vcmask (!%p4676_p5), 261120   ;;  %v1123_v1 = vld [vmem:[#allocation3 + $0x8] sm:$0xff] (!%p4676_p5) }
 0x1de   : > { %1121 = sbr.rel (%p4676_p5) target bundleno = 485 (0x1e5), region = 156  ;;  %1125 = vst.msk [vmem:[#allocation2] sm:$0xff] (!%p4676_p5), %vm1124_vm0, %v1122_v0  ;;  %1126 = vst.msk [vmem:[#allocation2 + $0x8] sm:$0xff] (!%p4676_p5), %vm1124_vm0, %v1123_v1 }
 0x1df   : > { %s4350_s20 = scalar_lea.vmem %s4673_s22, %s2727_s25  ;;  %s4355_s3 = scalar_lea.vmem %s4674_s10, %s2731_s21 }
 0x1e1   : > { %s4360_s4 = scalar_lea.vmem %s4675_s28, %s2732_s23 }
 0x1e5 PF: > { %v1137_v2 = vld [vmem:[%s1092_s2] sm:$0xff]  ;;  %v1138_v3 = vld [vmem:[%s1092_s2 + $0x8] sm:$0xff]  ;;  %v1139_v4 = vld [vmem:[%s1092_s2 + $0x10] sm:$0xff]  ;;  %vm1148_vm1 = vcmask 261120   ;;  %v3713_v22 = vmov 0.0|0.0   ;;  %vm3714_vm2 = vmmov 0  }
 0x1e6   : > { %v2943_v5 = vpack.c.bf16 %v1138_v3, %v1137_v2  ;;  %v1140_v6 = vld [vmem:[%s1092_s2 + $0x18] sm:$0xff]  ;;  %v4364_v7 = vld [vmem:[#allocation2] sm:$0xff]  ;;  %v1317_v10 = vld [vmem:[%s4345_s26 + $0x8] sm:$0xff]  ;;  %v3715_v23 = vmov 0.0   ;;  %s4677_s6 = scalar_lea.vmem [#allocation9], %s4292_s19  ;;  %s4678_s10 = scalar_lea.vmem [#allocation11], %s4292_s19 }
 0x1e7   : > { %v2947_v8 = vpack.c.bf16 %v1140_v6, %v1139_v4  ;;  %2811 = vmatprep.mubr.msk.f32.mxu0 %vm1148_vm1, %v4364_v7  ;;  %v1316_v9 = vld [vmem:[%s4345_s26] sm:$0xff]  ;;  %2822 = vmatprep.mubr.msk.f32.mxu1 %vm1148_vm1, %v4364_v7  ;;  %v1231_v12 = vld [vmem:[%s4340_s7 + $0x8] sm:$0xff]  ;;  %v1232_v14 = vld [vmem:[%s4340_s7 + $0x10] sm:$0xff]  ;;  %s4681_s5 = scalar_lea.vmem [#allocation12], %s4292_s19  ;;  %s4682_s24 = scalar_lea.vmem [#allocation14], %s4292_s19  ;;  %vm2148_vm4 = vcmask 523264  }
 0x1e8   : > { %2944 = vmatprep.subr.bf16.mxu0 %v2943_v5  ;;  %v1230_v11 = vld [vmem:[%s4340_s7] sm:$0xff]  ;;  %v1233_v15 = vld [vmem:[%s4340_s7 + $0x18] sm:$0xff]  ;;  %v2959_v16 = vpack.c.bf16 %v1317_v10, %v1316_v9  ;;  %v1318_v18 = vld [vmem:[%s4345_s26 + $0x10] sm:$0xff]  ;;  %s4684_s22 = scalar_lea.vmem [#allocation17], %s4292_s19  ;;  %s4685_s13 = scalar_lea.vmem [#allocation20], %s4292_s19 }
 0x1e9   : > { %2946 = vmatpush3.bf16.msra.mxu0 %v2943_v5  ;;  %v2951_v13 = vpack.c.bf16 %v1231_v12, %v1230_v11  ;;  %v2955_v17 = vpack.c.bf16 %v1233_v15, %v1232_v14  ;;  %v1319_v19 = vld [vmem:[%s4345_s26 + $0x18] sm:$0xff]  ;;  %v4378_v20 = vld [vmem:[#allocation2 + $0x8] sm:$0xff]  ;;  %v2686_v24 = vld [vmem:[%s4677_s6] ss:$0 sm:$0xff]  ;;  %s4686_s8 = scalar_lea.vmem [#allocation21], %s4292_s19  ;;  %s4687_s9 = sld [smem:[#allocation38_spill]] }
 0x1ea   : > { %2948 = vmatprep.subr.bf16.mxu0 %v2947_v8  ;;  %v2963_v21 = vpack.c.bf16 %v1319_v19, %v1318_v18  ;;  %v1129_v26 = vld [vmem:[#allocation6] sm:$0xff]  ;;  %v1130_v27 = vld [vmem:[#allocation6 + $0x8] sm:$0xff]  ;;  %vm4400_vm3 = vmpackc.low %vm1148_vm1, %vm1148_vm1  ;;  %s4688_s7 = scalar_lea.vmem [#allocation23], %s4292_s19  ;;  %s3716_s0 = smov [#allocation26]  }
 0x1eb   : > { %2952 = vmatprep.subr.bf16.mxu1 %v2951_v13  ;;  %v2689_v30 = vld [vmem:[%s4678_s10] ss:$0 sm:$0xff]  ;;  %v1131_v38 = vld [vmem:[#allocation6 + $0x10] sm:$0xff]  ;;  %v1132_v39 = vld [vmem:[#allocation6 + $0x18] sm:$0xff]  ;;  %s2291_s29 = sshll.u32 %s3716_s0, 4  ;;  %s2292_s29 = int_to_ptr.vmem [resolvable:$true] %s2291_s29 }
 0x1ec   : > { %2954 = vmatpush3.bf16.msra.mxu1 %v2951_v13  ;;  %v2692_v55 = vld [vmem:[%s4681_s5] ss:$0 sm:$0xff]  ;;  %v1134_v14 = vld [vmem:[#allocation8 + $0x8] sm:$0xff]  ;;  %v1135_v15 = vld [vmem:[#allocation8 + $0x10] sm:$0xff]  ;;  %s3603_s25 = scalar_lea.vmem %s2292_s29, 256  ;;  %p3610_p6 = scmp.lt.s32.totalorder %s2292_s29, %s2292_s29 }
 0x1ed   : > { %2950 = vmatpush3.bf16.msra.mxu0 %v2947_v8  ;;  %2956 = vmatprep.subr.bf16.mxu1 %v2955_v17  ;;  %v1133_v13 = vld [vmem:[#allocation8] sm:$0xff]  ;;  %v1901_v35 = vld [vmem:[%s4350_s20 + $0x8] sm:$0xff]  ;;  %p3604_p4 = scmp.ne.s32.totalorder %s2292_s29, %s3603_s25  ;;  %p3611_p13 = scmp.lt.s32.totalorder %s3603_s25, %s3603_s25 }
 0x1ee   : > { %2960 = vmatprep.subr.bf16.mxu0 %v2959_v16 }
 0x1ef   : > { %p3128_p2 = scmp.eq.s32.totalorder %s4687_s9, 1  ;;  %p3612_p7 = por %p3611_p13, %p3610_p6 }
 0x1f0   : > { %2812 = vmatmul.mubr.msk.f32.vlgmr.msra.gmra.mrb[0].mxu0 %vm1148_vm1, %v4378_v20  ;;  %2958 = vmatpush3.bf16.msra.mxu1 %v2955_v17  ;;  %v1136_v17 = vld [vmem:[#allocation8 + $0x18] sm:$0xff] }
 0x1f1   : > { %2962 = vmatpush3.bf16.msra.mxu0 %v2959_v16  ;;  %2833 = vmatprep.mubr.msk.f32.mxu0 %vm1148_vm1, %v4364_v7  ;;  %v2976_v16 = vpack.c.bf16 %v1134_v14, %v1133_v13  ;;  %v2979_v18 = vpack.c.bf16 %v1136_v17, %v1135_v15  ;;  %v2138_v13 = vld [vmem:[%s4355_s3 + $0x28] sm:$0xff]  ;;  %p3605_p9 = pnand %p3604_p4, %p3128_p2 }
 0x1f2   : > { %2964 = vmatprep.subr.bf16.mxu0 %v2963_v21  ;;  %2967 = vmatprep.subr.bf16.mxu1 %v3713_v22 }
 0x1f3   : > { %2823 = vmatmul.mubr.msk.f32.vlgmr.msra.gmra.mrb[0].mxu1 %vm1148_vm1, %v4378_v20  ;;  %p3606_p0 = pneg %p3605_p9 }
 0x1f4   : > { %2844 = vmatprep.mubr.msk.f32.mxu1 %vm3714_vm2, %v3715_v23 }
 0x1f5   : > { %2966 = vmatpush3.bf16.msra.mxu0 %v2963_v21  ;;  %p3613_p3 = pnand %p3612_p7, %p3606_p0 }
 0x1f6   : > { %2975 = vmatprep.subr.bf16.mxu0 %v3713_v22 }
 0x1f8   : > { %2834 = vmatmul.mubr.msk.f32.vlgmr.msra.gmra.mrb[2].mxu0 %vm1148_vm1, %v4378_v20 }
 0x1f9   : > { %2855 = vmatprep.mubr.msk.f32.mxu0 %vm3714_vm2, %v3715_v23  ;;  %2977 = vmatpush3.bf16.msra.mxu0 %v2976_v16 }
 0x1fa   : > { %2978 = vmatprep.subr.bf16.mxu0 %v3713_v22 }
 0x1fd   : > { %2980 = vmatpush3.bf16.msra.mxu0 %v2979_v18 }
 0x1fe   : > { %2981 = vmatprep.subr.bf16.mxu0 %v3713_v22 }
 0x2c3   : > { %v2813_v25 = vpop.f32.mrb[0].mxu0 }
 0x2c4   : > { %v1221_v28 = vpop.f32.mrb[1].mxu0  ;;  %v1227_v53 = vadd.f32 %v2813_v25, %v2686_v24 }
 0x2c5   : > { %v1222_v29 = vadd.f32 %v2686_v24, %v1221_v28 }
 0x2c6   : > { %v2824_v31 = vpop.f32.mrb[0].mxu1  ;;  %v1650_v56 = vmul.f32 %v1227_v53, %v1129_v26  ;;  %v1651_v57 = vmul.f32 %v1227_v53, %v1130_v27  ;;  %v1652_v60 = vmul.f32 %v1227_v53, %v1131_v38  ;;  %v1653_v61 = vmul.f32 %v1227_v53, %v1132_v39 }
 0x2c7   : > { %v1402_v32 = vmul.f32 %v1222_v29, %v1129_v26  ;;  %v1403_v33 = vmul.f32 %v1222_v29, %v1130_v27  ;;  %v1307_v34 = vpop.f32.mrb[1].mxu1  ;;  %v1313_v36 = vadd.f32 %v2824_v31, %v2689_v30  ;;  %v1404_v51 = vmul.f32 %v1222_v29, %v1131_v38 }
 0x2c8   : > { %v1308_v37 = vadd.f32 %v2689_v30, %v1307_v34  ;;  %v1405_v52 = vmul.f32 %v1222_v29, %v1132_v39  ;;  %v2988_v59 = vpack.c.bf16 %v1651_v57, %v1650_v56  ;;  %v2992_v62 = vpack.c.bf16 %v1653_v61, %v1652_v60  ;;  %v1900_v34 = vld [vmem:[%s4350_s20] sm:$0xff] }
 0x2c9   : > { %v2968_v40 = vpack.c.bf16 %v1403_v33, %v1402_v32  ;;  %v4404_v41 = vmul.f32 %v1313_v36, %v1129_v26  ;;  %v4406_v42 = vmul.f32 %v1313_v36, %v1130_v27  ;;  %v4408_v43 = vmul.f32 %v1313_v36, %v1131_v38 }
 0x2ca   : > { %v4410_v44 = vmul.f32 %v1313_v36, %v1132_v39  ;;  %v1406_v46 = vmul.f32 %v1308_v37, %v1129_v26  ;;  %v1407_v47 = vmul.f32 %v1308_v37, %v1130_v27  ;;  %v1408_v48 = vmul.f32 %v1308_v37, %v1131_v38  ;;  %v1902_v36 = vld [vmem:[%s4350_s20 + $0x10] sm:$0xff]  ;;  %v1903_v38 = vld [vmem:[%s4350_s20 + $0x18] sm:$0xff]  ;;  %s4683_s20 = scalar_lea.vmem [#allocation15], %s4292_s19 }
 0x2cb   : > { %2970 = vmatpush3.bf16.xpose.msk.msra.mxu1 %vm4400_vm3, %v2968_v40  ;;  %v2835_v45 = vpop.f32.mrb[2].mxu0  ;;  %v1409_v49 = vmul.f32 %v1308_v37, %v1132_v39  ;;  %v2972_v54 = vpack.c.bf16 %v1405_v52, %v1404_v51  ;;  %v3002_v2 = vpack.c.bf16 %v4406_v42, %v4404_v41  ;;  %v3007_v37 = vpack.c.bf16 %v1901_v35, %v1900_v34  ;;  %v2139_v34 = vld [vmem:[%s4355_s3 + $0x30] sm:$0xff]  ;;  %v2140_v35 = vld [vmem:[%s4355_s3 + $0x38] sm:$0xff] }
 0x2cc   : > { %2971 = vmatprep.subr.bf16.mxu1 %v3713_v22  ;;  %v1393_v50 = vpop.f32.mrb[3].mxu0  ;;  %v1399_v63 = vadd.f32 %v2835_v45, %v2692_v55  ;;  %v2982_v0 = vpack.c.bf16 %v1407_v47, %v1406_v46  ;;  %v3005_v3 = vpack.c.bf16 %v4410_v44, %v4408_v43  ;;  %v3011_v39 = vpack.c.bf16 %v1903_v38, %v1902_v36  ;;  %v2709_v46 = vld [vmem:[%s4682_s24] ss:$0 sm:$0xff] }
 0x2cd   : > { %v1394_v58 = vadd.f32 %v2692_v55, %v1393_v50  ;;  %v2985_v1 = vpack.c.bf16 %v1409_v49, %v1408_v48  ;;  %v3035_v36 = vpack.c.bf16 %v2140_v35, %v2139_v34 }
 0x2d3   : > { %2974 = vmatpush3.bf16.xpose.msk.msra.mxu1 %vm4400_vm3, %v2972_v54 }
 0x2d4   : > { %2987 = vmatprep.subr.bf16.mxu1 %v3713_v22 }
 0x2da   : > { %2845 = vmatmul.mubr.msk.f32.vlgmr.msra.gmra.mrb[2].mxu1 %vm1148_vm1, %v1394_v58 }
 0x2db   : > { %2990 = vmatpush3.bf16.xpose.msk.msra.mxu1 %vm4400_vm3, %v2988_v59  ;;  %2877 = vmatprep.mubr.msk.f32.mxu1 %vm3714_vm2, %v3715_v23 }
 0x2dc   : > { %2991 = vmatprep.subr.bf16.mxu1 %v3713_v22 }
 0x2e3   : > { %2994 = vmatpush3.bf16.xpose.msk.msra.mxu1 %vm4400_vm3, %v2992_v62 }
 0x2e4   : > { %3008 = vmatprep.subr.bf16.mxu1 %v3007_v37 }
 0x2ea   : > { %2878 = vmatmul.mubr.msk.f32.vlgmr.msra.gmra.mrb[4].mxu1 %vm1148_vm1, %v1399_v63  ;;  %v2039_v63 = vld [vmem:[%s4313_s27] sm:$0xff] }
 0x2eb   : > { %3010 = vmatpush3.bf16.msra.mxu1 %v3007_v37  ;;  %v2714_v37 = vld [vmem:[%s4685_s13] ss:$0 sm:$0xff] }
 0x2ec   : > { %3012 = vmatprep.subr.bf16.mxu1 %v3011_v39 }
 0x2ef   : > { %3014 = vmatpush3.bf16.msra.mxu1 %v3011_v39 }
 0x3ad   : > { %v1491_v4 = vpop.f32.mrb[2].mxu1 }
 0x3ae   : > { %v1495_v5 = vmul.f32 0.70710677, %v1491_v4  ;;  %v2846_v6 = vpop.f32.mrb[3].mxu1 }
 0x3af   : > { %v2134_v6 = vld [vmem:[%s4355_s3 + $0x8] sm:$0xff] }
 0x3b0   : > { %v1496_v8 = vsel %vm1148_vm1, %v1495_v5, -inf }
 0x3b1   : > { %1497 = vmax.xlane.f32.xlu0 %v1496_v8  ;;  %v2135_v8 = vld [vmem:[%s4355_s3 + $0x10] sm:$0xff] }
 0x3bd   : > { %v1739_v9 = vpop.f32.mrb[4].mxu1 }
 0x3be   : > { %v1743_v10 = vmul.f32 0.70710677, %v1739_v9  ;;  %v2879_v11 = vpop.f32.mrb[5].mxu1 }
 0x3c0   : > { %v1744_v12 = vsel %vm1148_vm1, %v1743_v10, -inf }
 0x3c1   : > { %1745 = vmax.xlane.f32.xlu0 %v1744_v12  ;;  %v2137_v12 = vld [vmem:[%s4355_s3 + $0x20] sm:$0xff] }
 0x3c2   : > { %v3031_v14 = vpack.c.bf16 %v2138_v13, %v2137_v12 }
 0x43e   : > { %v1498_v19 = vpop.xlane.xlu0 %1497 }
 0x43f   : > { %v1499_v21 = vsub.f32 %v1495_v5, %v1498_v19  ;;  %v2133_v5 = vld [vmem:[%s4355_s3] sm:$0xff] }
 0x440   : > { %v3023_v9 = vpack.c.bf16 %v2134_v6, %v2133_v5 }
 0x441   : > { %v1500_v24 = vmul.f32 1.442695, %v1499_v21 }
 0x442   : > { %3024 = vmatprep.subr.bf16.mxu1 %v3023_v9 }
 0x443   : > { %3173 = vpow2.f32 %v1500_v24 }
 0x44d   : > { %v3174_v25 = vpop.eup %3173 }
 0x44e   : > { %2856 = vmatmul.mubr.msk.f32.vlgmr.msra.gmra.mrb[4].mxu0 %vm1148_vm1, %v3174_v25  ;;  %v1746_v26 = vpop.xlane.xlu0 %1745 }
 0x44f   : > { %2983 = vmatpush3.bf16.msra.mxu0 %v2982_v0  ;;  %2866 = vmatprep.mubr.msk.f32.mxu0 %vm3714_vm2, %v3715_v23  ;;  %v1747_v29 = vsub.f32 %v1743_v10, %v1746_v26  ;;  %v2040_v0 = vld [vmem:[%s4313_s27 + $0x8] sm:$0xff] }
 0x450   : > { %2984 = vmatprep.subr.bf16.mxu0 %v3713_v22  ;;  %v2136_v10 = vld [vmem:[%s4355_s3 + $0x18] sm:$0xff] }
 0x451   : > { %v1748_v30 = vmul.f32 1.442695, %v1747_v29  ;;  %v3027_v11 = vpack.c.bf16 %v2136_v10, %v2135_v8 }
 0x453   : > { %2986 = vmatpush3.bf16.msra.mxu0 %v2985_v1  ;;  %v3015_v1 = vpack.c.bf16 %v2040_v0, %v2039_v63 }
 0x454   : > { %2995 = vmatprep.subr.bf16.mxu0 %v3713_v22 }
 0x521   : > { %v1571_v27 = vpop.f32.mrb[4].mxu0 }
 0x522   : > { %3175 = vrcp.f32 %v1571_v27  ;;  %v2857_v28 = vpop.f32.mrb[5].mxu0  ;;  %v2713_v27 = vld [vmem:[%s4684_s22] ss:$0 sm:$0xff] }
 0x523   : > { %3177 = vpow2.f32 %v1748_v30 }
 0x52c   : > { %v3176_v31 = vpop.eup %3175 }
 0x52d   : > { %v1576_v32 = vmul.f32 %v3176_v31, %v3174_v25  ;;  %v3178_v33 = vpop.eup %3177  ;;  %v2712_v25 = vld [vmem:[%s4683_s20] ss:$0 sm:$0xff] }
 0x52f   : > { %1898 = vst.msk [vmem:[%s4360_s4] sm:$0xff] %vm1148_vm1, %v1576_v32  ;;  %2867 = vmatmul.mubr.msk.f32.vlgmr.msra.gmra.mrb[6].mxu0 %vm1148_vm1, %v1576_v32 }
 0x530   : > { %2997 = vmatpush3.bf16.msra.mxu0 %v2976_v16  ;;  %2888 = vmatprep.mubr.msk.f32.mxu0 %vm3714_vm2, %v3715_v23 }
 0x531   : > { %2998 = vmatprep.subr.bf16.mxu0 %v3713_v22 }
 0x534   : > { %3000 = vmatpush3.bf16.msra.mxu0 %v2979_v18 }
 0x535   : > { %3001 = vmatprep.subr.bf16.mxu0 %v3713_v22 }
 0x537   : > { %2889 = vmatmul.mubr.msk.f32.vlgmr.msra.gmra.mrb[8].mxu0 %vm1148_vm1, %v3178_v33 }
 0x538   : > { %3003 = vmatpush3.bf16.msra.mxu0 %v3002_v2  ;;  %2899 = vmatprep.mubr.msk.f32.mxu0 %vm3714_vm2, %v3715_v23  ;;  %v2041_v2 = vld [vmem:[%s4313_s27 + $0x10] sm:$0xff] }
 0x539   : > { %3004 = vmatprep.subr.bf16.mxu0 %v3713_v22 }
 0x53c   : > { %3006 = vmatpush3.bf16.msra.mxu0 %v3005_v3  ;;  %v2042_v3 = vld [vmem:[%s4313_s27 + $0x18] sm:$0xff]  ;;  %s4689_s27 = scalar_lea.vmem [#allocation24], %s4292_s19 }
 0x53d   : > { %3016 = vmatprep.subr.bf16.mxu0 %v3015_v1  ;;  %v3019_v4 = vpack.c.bf16 %v2042_v3, %v2041_v2  ;;  %v2720_v2 = vld [vmem:[%s4688_s7] ss:$0 sm:$0xff] }
 0x53e   : > { %v2721_v6 = vld [vmem:[%s4689_s27] ss:$0 sm:$0xff] }
 0x602   : > { %v1646_v40 = vpop.f32.mrb[6].mxu0 }
 0x603   : > { %v2868_v41 = vpop.f32.mrb[7].mxu0  ;;  %2910 = vmatprep.mubr.msk.f32.mxu1 %vm1148_vm1, %v1646_v40 }
 0x60a   : > { %v1819_v23 = vpop.f32.mrb[8].mxu0 }
 0x60b   : > { %3179 = vrcp.f32 %v1819_v23  ;;  %v2890_v22 = vpop.f32.mrb[9].mxu0 }
 0x615   : > { %v3180_v42 = vpop.eup %3179 }
 0x616   : > { %v1824_v43 = vmul.f32 %v3180_v42, %v3178_v33  ;;  %v2717_v42 = vld [vmem:[%s4686_s8] ss:$0 sm:$0xff] }
 0x618   : > { %1899 = vst.msk [vmem:[%s4360_s4 + $0x8] sm:$0xff] %vm1148_vm1, %v1824_v43  ;;  %2900 = vmatmul.mubr.msk.f32.vlgmr.msra.gmra.mrb[10].mxu0 %vm1148_vm1, %v1824_v43 }
 0x619   : > { %3018 = vmatpush3.bf16.msra.mxu0 %v3015_v1 }
 0x61a   : > { %3020 = vmatprep.subr.bf16.mxu0 %v3019_v4 }
 0x61d   : > { %3022 = vmatpush3.bf16.msra.mxu0 %v3019_v4 }
 0x6eb   : > { %v1894_v44 = vpop.f32.mrb[10].mxu0 }
 0x6ec   : > { %v2901_v45 = vpop.f32.mrb[11].mxu0  ;;  %2911 = vmatmul.mubr.msk.f32.vlgmr.msra.gmra.mrb[6].mxu1 %vm1148_vm1, %v1894_v44 }
 0x6ed   : > { %3026 = vmatpush3.bf16.msra.mxu1 %v3023_v9 }
 0x6ee   : > { %3028 = vmatprep.subr.bf16.mxu1 %v3027_v11 }
 0x6f1   : > { %3030 = vmatpush3.bf16.msra.mxu1 %v3027_v11 }
 0x6f2   : > { %3032 = vmatprep.subr.bf16.mxu1 %v3031_v14 }
 0x6f5   : > { %3034 = vmatpush3.bf16.msra.mxu1 %v3031_v14 }
 0x6f6   : > { %3036 = vmatprep.subr.bf16.mxu1 %v3035_v36 }
 0x6f9   : > { %3038 = vmatpush3.bf16.msra.mxu1 %v3035_v36 }
 0x7bf   : > { %v2912_v47 = vpop.f32.mrb[6].mxu1 }
 0x7c0   : > { %v1983_v48 = vpop.f32.mrb[7].mxu1  ;;  %v1989_v49 = vadd.f32 %v2912_v47, %v2709_v46 }
 0x7c1   : > { %v1984_v50 = vadd.f32 %v2709_v46, %v1983_v48 }
 0x7c2   : > { %v1993_v53 = vadd.f32 %v1989_v49, %v4378_v20 }
 0x7c3   : > { %v1992_v51 = vadd.f32 %v1984_v50, %v4364_v7 }
 0x7c4   : > { %v1997_v54 = vsel %vm1148_vm1, %v1993_v53, 0.0 }
 0x7c5   : > { %v1994_v52 = vsel %vm1148_vm1, %v1992_v51, 0.0 }
 0x7c6   : > { %1995 = vadd.xlane.f32.xlu1 %v1994_v52 }
 0x7ca   : > { %1998 = vadd.xlane.f32.xlu1 %v1997_v54 }
 0x853   : > { %v1996_v55 = vpop.xlane.xlu1 %1995 }
 0x854   : > { %v2001_v56 = vmul.f32 0.03125, %v1996_v55 }
 0x856   : > { %v2003_v57 = vsub.f32 %v1992_v51, %v2001_v56 }
 0x857   : > { %v1999_v58 = vpop.xlane.xlu1 %1998 }
 0x858   : > { %v2002_v59 = vmul.f32 0.03125, %v1999_v58  ;;  %v2005_v60 = vmul.f32 %v2003_v57, %v2003_v57 }
 0x85a   : > { %v2004_v61 = vsub.f32 %v1993_v53, %v2002_v59  ;;  %v2007_v7 = vsel %vm1148_vm1, %v2005_v60, 0.0 }
 0x85b   : > { %2008 = vadd.xlane.f32.xlu0 %v2007_v7 }
 0x85c   : > { %v2006_v20 = vmul.f32 %v2004_v61, %v2004_v61 }
 0x85e   : > { %v2010_v62 = vsel %vm1148_vm1, %v2006_v20, 0.0 }
 0x85f   : > { %2011 = vadd.xlane.f32.xlu1 %v2010_v62 }
 0x8e8   : > { %v2009_v15 = vpop.xlane.xlu0 %2008 }
 0x8e9   : > { %v2013_v16 = vmul.f32 0.03125, %v2009_v15 }
 0x8eb   : > { %v2015_v17 = vadd.f32 1e-05, %v2013_v16 }
 0x8ec   : > { %v2012_v18 = vpop.xlane.xlu1 %2011 }
 0x8ed   : > { %3181 = vrsqrt.f32 %v2015_v17  ;;  %v2014_v19 = vmul.f32 0.03125, %v2012_v18 }
 0x8ef   : > { %v2016_v21 = vadd.f32 1e-05, %v2014_v19 }
 0x8f1   : > { %3183 = vrsqrt.f32 %v2016_v21 }
 0x8f7   : > { %v3182_v24 = vpop.eup %3181 }
 0x8f8   : > { %v2019_v26 = vmul.f32 %v3182_v24, %v2003_v57 }
 0x8fa   : > { %v2028_v28 = vmul.f32 %v2712_v25, %v2019_v26 }
 0x8fb   : > { %v3184_v29 = vpop.eup %3183 }
 0x8fc   : > { %v2020_v30 = vmul.f32 %v3184_v29, %v2004_v61  ;;  %v2037_v31 = vadd.f32 %v2713_v27, %v2028_v28 }
 0x8fe   : > { %v2029_v32 = vmul.f32 %v2712_v25, %v2020_v30  ;;  %2921 = vmatprep.mubr.msk.f32.mxu0 %vm1148_vm1, %v2037_v31 }
 0x900   : > { %v2038_v33 = vadd.f32 %v2713_v27, %v2029_v32 }
 0x902   : > { %2922 = vmatmul.mubr.msk.f32.vlgmr.msra.gmra.mrb[12].mxu0 %vm1148_vm1, %v2038_v33 }
 0x9d5   : > { %v2923_v38 = vpop.f32.mrb[12].mxu0 }
 0x9d6   : > { %v2128_v39 = vadd.f32 %v2923_v38, %v2714_v37  ;;  %v2122_v40 = vpop.f32.mrb[13].mxu0 }
 0x9d7   : > { %v2123_v41 = vadd.f32 %v2714_v37, %v2122_v40 }
 0x9d8   : > { %v2132_v22 = vmax.f32 %v2128_v39, 0.0 }
 0x9d9   : > { %v2131_v23 = vmax.f32 %v2123_v41, 0.0 }
 0x9db   : > { %2940 = vmatprep.mubr.msk.f32.mxu1 %vm2148_vm4, %v2131_v23 }
 0x9dc   : > { %2941 = vmatmul.mubr.msk.f32.vlgmr.msra.gmra.mrb[8].mxu1 %vm2148_vm4, %v2132_v22 }
 0xaaf   : > { %v2942_v43 = vpop.f32.mrb[8].mxu1 }
 0xab0   : > { %v2227_v44 = vadd.f32 %v2942_v43, %v2717_v42  ;;  %v2221_v45 = vpop.f32.mrb[9].mxu1 }
 0xab1   : > { %v2222_v46 = vadd.f32 %v2717_v42, %v2221_v45 }
 0xab2   : > { %v2231_v47 = vadd.f32 %v2227_v44, %v2038_v33 }
 0xab3   : > { %v2230_v48 = vadd.f32 %v2222_v46, %v2037_v31 }
 0xab4   : > { %v2235_v49 = vsel %vm1148_vm1, %v2231_v47, 0.0 }
 0xab5   : > { %2236 = vadd.xlane.f32.xlu1 %v2235_v49  ;;  %v2232_v50 = vsel %vm1148_vm1, %v2230_v48, 0.0 }
 0xab6   : > { %2233 = vadd.xlane.f32.xlu0 %v2232_v50 }
 0xb42   : > { %v2237_v51 = vpop.xlane.xlu1 %2236 }
 0xb43   : > { %v2239_v52 = vmul.f32 0.03125, %v2237_v51  ;;  %v2234_v53 = vpop.xlane.xlu0 %2233 }
 0xb44   : > { %v2238_v54 = vmul.f32 0.03125, %v2234_v53 }
 0xb45   : > { %v2241_v55 = vsub.f32 %v2231_v47, %v2239_v52 }
 0xb46   : > { %v2240_v56 = vsub.f32 %v2230_v48, %v2238_v54 }
 0xb47   : > { %v2243_v57 = vmul.f32 %v2241_v55, %v2241_v55 }
 0xb48   : > { %v2242_v58 = vmul.f32 %v2240_v56, %v2240_v56 }
 0xb49   : > { %v2247_v59 = vsel %vm1148_vm1, %v2243_v57, 0.0 }
 0xb4a   : > { %2248 = vadd.xlane.f32.xlu1 %v2247_v59  ;;  %v2244_v60 = vsel %vm1148_vm1, %v2242_v58, 0.0 }
 0xb4b   : > { %2245 = vadd.xlane.f32.xlu0 %v2244_v60 }
 0xbd7   : > { %v2249_v61 = vpop.xlane.xlu1 %2248 }
 0xbd8   : > { %v2251_v7 = vmul.f32 0.03125, %v2249_v61  ;;  %v2246_v20 = vpop.xlane.xlu0 %2245 }
 0xbd9   : > { %v2250_v62 = vmul.f32 0.03125, %v2246_v20 }
 0xbda   : > { %v2253_v63 = vadd.f32 1e-05, %v2251_v7 }
 0xbdb   : > { %v2252_v0 = vadd.f32 1e-05, %v2250_v62 }
 0xbdc   : > { %3185 = vrsqrt.f32 %v2253_v63 }
 0xbdd   : > { %3187 = vrsqrt.f32 %v2252_v0 }
 0xbe6   : > { %v3186_v1 = vpop.eup %3185 }
 0xbe7   : > { %v3188_v3 = vpop.eup %3187  ;;  %v2257_v4 = vmul.f32 %v3186_v1, %v2241_v55 }
 0xbe8   : > { %v2256_v5 = vmul.f32 %v3188_v3, %v2240_v56 }
 0xbe9   : > { %v2266_v8 = vmul.f32 %v2720_v2, %v2257_v4 }
 0xbea   : > { %v2265_v9 = vmul.f32 %v2720_v2, %v2256_v5 }
 0xbeb   : > { %v2275_v10 = vadd.f32 %v2721_v6, %v2266_v8 }
 0xbec   : > { %v2274_v11 = vadd.f32 %v2721_v6, %v2265_v9 }
 0xbed   : > { %2277 = vst.msk [vmem:[#allocation2 + $0x8] sm:$0xff] %vm1148_vm1, %v2275_v10  ;;  %2279 = vst.msk [vmem:[#allocation26 + $0x8] sm:$0xff] %vm1148_vm1, %v2275_v10 }
 0xbee   : > { %2276 = vst.msk [vmem:[#allocation2] sm:$0xff] %vm1148_vm1, %v2274_v11  ;;  %2278 = vst.msk [vmem:[#allocation26] sm:$0xff] %vm1148_vm1, %v2274_v11 }
 0xbef   : > { %3616 = shalt.err (!%p3613_p3)
}
 0xbf0   : > { %s4690_s2 = sld [smem:[#allocation58_spill]] }
 0xbf6   : > { %s3617_s26 = scalar_lea.hbm %s4690_s2, 256 }
 0xbf7   : > { %p3618_p12 = scmp.ne.s32.totalorder %s4690_s2, %s3617_s26  ;;  %p3623_p11 = scmp.lt.u32.totalorder %s3617_s26, %s4690_s2 }
 0xbf9   : > { %p3619_p10 = pnand %p3618_p12, %p3128_p2 }
 0xbfb   : > { %p3620_p1 = pneg %p3619_p10 }
 0xbfd   : > { %p3625_p8 = pnand %p3623_p11, %p3620_p1 }
 0xbff   : > { %3628 = shalt.err (!%p3625_p8)
}
 0xc00   : > { %s3717_s1 = smov 128   ;;  %s3718_s28 = smov 8  }
 0xc01   : > { %3074 = dma.vmem_to_hbm [thread:$0]  (%p3128_p2), %s2292_s29, 256, %s4690_s2, [#allocation5], %s3717_s1, %s3717_s1, %s3718_s28  }
 0xc02   : > { %3678 = dma.done.wait (%p3128_p2), [#allocation5], 256  }
 0xc03   : > { %3680 = vsyncadd (%p3128_p2), [#allocation5], 4294967040 }
 0xc04 PF: > { %s4691_s24 = sld [smem:[#allocation39_spill]]  ;;  %s4692_s1 = sld [smem:[#allocation36_spill]] }
 0xc05   : > { %s4693_s22 = sld [smem:[#allocation37_spill]]  ;;  %s4694_s23 = sld [smem:[#allocation40_spill]] }
 0xc0a   : > { %p49_p5 = scmp.ge.s32.totalorder %s4691_s24, 4  }
 0xc0c   :  { %51 = sbr.rel (!%p49_p5) target bundleno = 34 (0x22), region = 297 }
 0xc13   :  { %2318 = vsyncpa [#allocation4], 1 }
 0xc14   :  { %2320 = vsyncpa [#allocation4 + $0x1], 1 }
 0xc15   :  { %2321 = vsyncpa [#allocation7], 1 }
 0xc16   :  { %2322 = vsyncpa [#allocation10], 1 }
 0xc17   :  { %2324 = vsyncpa [#allocation10 + $0x1], 1 }
 0xc18   :  { %2325 = vsyncpa [#allocation13], 1 }
 0xc19   :  { %2327 = vsyncpa [#allocation13 + $0x1], 1 }
 0xc1a   :  { %2328 = vsyncpa [#allocation16], 1 }
 0xc1b   :  { %2330 = vsyncpa [#allocation16 + $0x1], 1 }
 0xc1c   :  { %2331 = vsyncpa [#allocation19], 1 }
 0xc1d   :  { %2333 = vsyncpa [#allocation19 + $0x1], 1 }
 0xc1e   :  { %2334 = vsyncpa [#allocation22], 1 }
 0xc1f   :  { %2336 = vsyncpa [#allocation22 + $0x1], 1 }
 0xc20   :  { %2337 = vsyncpa [#allocation25], 1 }
 0xc21   :  { %2339 = vsyncpa [#allocation25 + $0x1], 1 }
 0xc22   :  { %2340 = vsyncpa [#allocation5], 1 }
 0xc23   :  { %2342 = vsyncpa [#allocation5 + $0x1], 1 }

</bundles_post_ra>
